<compile_context>
chip_gen: v6e
topology: v6e:2x2x1
jax: 0.10.0
libtpu: 0.0.40
codegen_flags: <defaults>
</compile_context>

<pallas_src>
import jax
import jax.numpy as jnp
from jax import lax
from jax.experimental import pallas as pl
from jax.experimental.pallas import tpu as pltpu

# ----------------------------- configuration --------------------------------
IN_DIM = 32          # in_dim of TypeEncoder
DF_DIM = 128         # df_dim (hidden width) — lane-aligned
MLP_NUM = 4          # mlp_num hidden layers
OUT_DIM = 1          # out_dim
M_ROWS = 256         # number of input latents (batch of z vectors)

NEG_SLOPE_FIRST = 0.02   # leaky_relu slope after linear_1
NEG_SLOPE_HIDDEN = 0.01  # leaky_relu slope after lin_i
LANE = 128               # TPU lane width (output head padded to this)


# ------------------------------ kernel ---------------------------------------
def _leaky(x, slope):
    return jnp.where(x >= 0, x, slope * x)


def _type_encoder_kernel(z_ref, w1_ref, b1_ref, wh_ref, bh_ref, wo_ref, bo_ref,
                         out_ref):
    # First layer: (tile_m, in_dim) @ (in_dim, df) + (1, df)
    h = jnp.dot(z_ref[...], w1_ref[...],
                preferred_element_type=jnp.float32) + b1_ref[...]
    h = _leaky(h, NEG_SLOPE_FIRST)

    # Hidden layers: read each layer's weights directly from the ref so at most
    # one (df, df) weight tile is live at a time (no register-file spills);
    # VMEM->vreg re-loads are essentially free (3 vld slots / cycle).
    for i in range(wh_ref.shape[0]):
        h = jnp.dot(h, wh_ref[i],
                    preferred_element_type=jnp.float32) + bh_ref[i:i + 1, :]
        h = _leaky(h, NEG_SLOPE_HIDDEN)

    # Output head (lane-padded to 128 columns -> unmasked lane-dense stores).
    out_ref[...] = jnp.dot(h, wo_ref[...],
                           preferred_element_type=jnp.float32) + bo_ref[...]


# --------------------------- device-aware tiling ------------------------------
def _num_tensorcores():
    """2 TensorCores per chip on v7x; 1 on v5e/v6e (and as a safe default)."""
    try:
        kind = jax.devices()[0].device_kind.lower()
    except Exception:
        return 1
    return 2 if "v7" in kind else 1


def _pick_tiling(m, num_tc, max_tile=1024):
    """Row padding + tile size: one big tile per TensorCore, capped at
    max_tile rows, with the grid kept a multiple of num_tc and tiles a
    multiple of 8 sublanes."""
    unit = 8 * num_tc
    m_pad = ((m + unit - 1) // unit) * unit
    tile = m_pad // num_tc
    while tile > max_tile and tile % 16 == 0:
        tile //= 2
    return m_pad, tile


# --------------------------- parameter preparation ----------------------------
def prepare_params(params, lane=LANE):
    """One-time prep: zero-pad the out_dim head to a full 128-lane block so the
    kernel's output store is lane-dense (no masked vst); reshape biases to rows."""
    df, out_dim = params['wo'].shape
    out_pad = ((out_dim + lane - 1) // lane) * lane
    wo_p = jnp.zeros((df, out_pad), jnp.float32).at[:, :out_dim].set(params['wo'])
    bo_p = jnp.zeros((1, out_pad), jnp.float32).at[:, :out_dim].set(
        params['bo'].reshape(1, -1))
    return {
        'w1': params['w1'].astype(jnp.float32),
        'b1': params['b1'].reshape(1, -1).astype(jnp.float32),
        'wh': params['wh'].astype(jnp.float32),
        'bh': params['bh'].astype(jnp.float32),
        'wo_p': wo_p,
        'bo_p': bo_p,
        'out_dim': out_dim,
    }


# ------------------------------ host wrapper ----------------------------------
def make_type_encoder(params):
    prep = prepare_params(params)
    in_dim, _df = prep['w1'].shape
    out_pad = prep['wo_p'].shape[1]
    out_dim = prep['out_dim']
    num_tc = _num_tensorcores()

    weights = (prep['w1'], prep['b1'], prep['wh'], prep['bh'],
               prep['wo_p'], prep['bo_p'])

    def full_spec(a):
        zeros = (0,) * a.ndim
        return pl.BlockSpec(a.shape, lambda i, _z=zeros: _z)

    @jax.jit
    def forward(z):
        m = z.shape[0]
        m_pad, tile_m = _pick_tiling(m, num_tc)
        z_p = jnp.pad(z, ((0, m_pad - m), (0, 0))) if m_pad != m else z

        in_specs = ([pl.BlockSpec((tile_m, in_dim), lambda i: (i, 0))]
                    + [full_spec(a) for a in weights])
        out_specs = pl.BlockSpec((tile_m, out_pad), lambda i: (i, 0))

        out = pl.pallas_call(
            _type_encoder_kernel,
            grid_spec=pltpu.PrefetchScalarGridSpec(
                num_scalar_prefetch=0,
                grid=(m_pad // tile_m,),
                in_specs=in_specs,
                out_specs=out_specs),
            out_shape=jax.ShapeDtypeStruct((m_pad, out_pad), jnp.float32),
            compiler_params=pltpu.CompilerParams(
                dimension_semantics=("parallel",)),
        )(z_p, *weights)
        # Padded rows / dead lanes are sliced off here (fuses under jit).
        return out[:m, :out_dim]

    return forward


# ----------------------------- parameter init ---------------------------------
def init_params(key, in_dim=IN_DIM, df_dim=DF_DIM, mlp_num=MLP_NUM,
                out_dim=OUT_DIM):
    # xavier_uniform_ weights (symmetric in fan_in/fan_out), zero biases,
    # matching the PyTorch initialization.
    def xavier(k, fi, fo):
        bound = (6.0 / (fi + fo)) ** 0.5
        return jax.random.uniform(k, (fi, fo), jnp.float32, -bound, bound)

    ks = jax.random.split(key, mlp_num + 2)
    return {
        'w1': xavier(ks[0], in_dim, df_dim),
        'b1': jnp.zeros((1, df_dim), jnp.float32),
        'wh': jnp.stack([xavier(ks[1 + i], df_dim, df_dim)
                         for i in range(mlp_num)]),
        'bh': jnp.zeros((mlp_num, df_dim), jnp.float32),
        'wo': xavier(ks[mlp_num + 1], df_dim, out_dim),
        'bo': jnp.zeros((1, out_dim), jnp.float32),
    }


# ------------------------- pure-JAX reference (check) -------------------------
def _ref_forward(z, p):
    # True-f32 reference (matches torch semantics). The kernel intentionally
    # uses DEFAULT (bf16 MXU) precision, so the tolerance below is loosened.
    prec = lax.Precision.HIGHEST
    h = _leaky(jnp.dot(z, p['w1'], precision=prec) + p['b1'], NEG_SLOPE_FIRST)
    for i in range(p['wh'].shape[0]):
        h = _leaky(jnp.dot(h, p['wh'][i], precision=prec) + p['bh'][i:i + 1, :],
                   NEG_SLOPE_HIDDEN)
    return jnp.dot(h, p['wo'], precision=prec) + p['bo']


# ----------------------------------- main -------------------------------------
if __name__ == "__main__":
    key = jax.random.PRNGKey(0)
    kp, kz = jax.random.split(key)
    params = init_params(kp)
    z = jax.random.normal(kz, (M_ROWS, IN_DIM), jnp.float32)

    forward = make_type_encoder(params)
    out = jax.block_until_ready(forward(z))
    assert out.shape == (M_ROWS, OUT_DIM), out.shape

    ref = _ref_forward(z, params)
    err = float(jnp.max(jnp.abs(out - ref)))
    # bf16-MXU DEFAULT precision vs exact-f32 reference over 6 stacked matmuls.
    assert err < 3e-2, f"max abs err vs f32 reference: {err}"

    print("KERNEL_OK")
</pallas_src>

<mosaic_0001>
module attributes {stable_mosaic.version = 11 : i64} {
  func.func @_type_encoder_kernel(%arg0: i32, %arg1: memref<256x32xf32, #tpu.memory_space<vmem>>, %arg2: memref<32x128xf32, #tpu.memory_space<vmem>>, %arg3: memref<1x128xf32, #tpu.memory_space<vmem>>, %arg4: memref<4x128x128xf32, #tpu.memory_space<vmem>>, %arg5: memref<4x128xf32, #tpu.memory_space<vmem>>, %arg6: memref<128x128xf32, #tpu.memory_space<vmem>>, %arg7: memref<1x128xf32, #tpu.memory_space<vmem>>, %arg8: memref<256x128xf32, #tpu.memory_space<vmem>>) attributes {dimension_semantics = [#tpu.dimension_semantics<parallel>], iteration_bounds = array<i64: 1>, scalar_prefetch = 0 : i64, scratch_operands = 0 : i64, tpu.core_type = #tpu.core_type<tc>, window_params = [{transform_indices = @transform_0, window_bounds = array<i64: 256, 32>}, {pipeline_mode = #tpu.pipeline_mode<synchronous>, transform_indices = @transform_1, window_bounds = array<i64: 32, 128>}, {pipeline_mode = #tpu.pipeline_mode<synchronous>, transform_indices = @transform_2, window_bounds = array<i64: 1, 128>}, {pipeline_mode = #tpu.pipeline_mode<synchronous>, transform_indices = @transform_3, window_bounds = array<i64: 4, 128, 128>}, {pipeline_mode = #tpu.pipeline_mode<synchronous>, transform_indices = @transform_4, window_bounds = array<i64: 4, 128>}, {pipeline_mode = #tpu.pipeline_mode<synchronous>, transform_indices = @transform_5, window_bounds = array<i64: 128, 128>}, {pipeline_mode = #tpu.pipeline_mode<synchronous>, transform_indices = @transform_6, window_bounds = array<i64: 1, 128>}, {transform_indices = @transform_7, window_bounds = array<i64: 256, 128>}]} {
    %c0 = arith.constant 0 : index
    %c0_0 = arith.constant 0 : index
    %0 = vector.load %arg1[%c0, %c0_0] : memref<256x32xf32, #tpu.memory_space<vmem>>, vector<256x32xf32>
    %c0_1 = arith.constant 0 : index
    %c0_2 = arith.constant 0 : index
    %1 = vector.load %arg2[%c0_1, %c0_2] : memref<32x128xf32, #tpu.memory_space<vmem>>, vector<32x128xf32>
    %cst = arith.constant dense<0.000000e+00> : vector<256x128xf32>
    %2 = tpu.matmul %0, %1, %cst {dimension_numbers = #tpu.dot_dimension_numbers<[1], [0], [0], [1], [0, 0, 1, 1], [], []>} : vector<256x32xf32>, vector<32x128xf32>, vector<256x128xf32> -> vector<256x128xf32>
    %c0_3 = arith.constant 0 : index
    %c0_4 = arith.constant 0 : index
    %3 = vector.load %arg3[%c0_3, %c0_4] : memref<1x128xf32, #tpu.memory_space<vmem>>, vector<1x128xf32>
    %4 = vector.broadcast %3 : vector<1x128xf32> to vector<256x128xf32>
    %5 = arith.addf %2, %4 : vector<256x128xf32>
    %cst_5 = arith.constant 0.000000e+00 : f32
    %6 = vector.broadcast %cst_5 : f32 to vector<256x128xf32>
    %7 = arith.cmpf oge, %5, %6 : vector<256x128xf32>
    %cst_6 = arith.constant 2.000000e-02 : f32
    %8 = vector.broadcast %cst_6 : f32 to vector<256x128xf32>
    %9 = arith.mulf %8, %5 : vector<256x128xf32>
    %10 = arith.select %7, %5, %9 : vector<256x128xi1>, vector<256x128xf32>
    %c0_7 = arith.constant 0 : index
    %c0_8 = arith.constant 0 : index
    %c0_9 = arith.constant 0 : index
    %11 = vector.load %arg4[%c0_7, %c0_8, %c0_9] : memref<4x128x128xf32, #tpu.memory_space<vmem>>, vector<1x128x128xf32>
    %12 = vector.shape_cast %11 : vector<1x128x128xf32> to vector<128x128xf32>
    %cst_10 = arith.constant dense<0.000000e+00> : vector<256x128xf32>
    %13 = tpu.matmul %10, %12, %cst_10 {dimension_numbers = #tpu.dot_dimension_numbers<[1], [0], [0], [1], [0, 0, 1, 1], [], []>} : vector<256x128xf32>, vector<128x128xf32>, vector<256x128xf32> -> vector<256x128xf32>
    %c0_11 = arith.constant 0 : index
    %c0_12 = arith.constant 0 : index
    %14 = vector.load %arg5[%c0_11, %c0_12] : memref<4x128xf32, #tpu.memory_space<vmem>>, vector<1x128xf32>
    %15 = vector.broadcast %14 : vector<1x128xf32> to vector<256x128xf32>
    %16 = arith.addf %13, %15 : vector<256x128xf32>
    %cst_13 = arith.constant 0.000000e+00 : f32
    %17 = vector.broadcast %cst_13 : f32 to vector<256x128xf32>
    %18 = arith.cmpf oge, %16, %17 : vector<256x128xf32>
    %cst_14 = arith.constant 0.00999999977 : f32
    %19 = vector.broadcast %cst_14 : f32 to vector<256x128xf32>
    %20 = arith.mulf %19, %16 : vector<256x128xf32>
    %21 = arith.select %18, %16, %20 : vector<256x128xi1>, vector<256x128xf32>
    %c1 = arith.constant 1 : index
    %c0_15 = arith.constant 0 : index
    %c0_16 = arith.constant 0 : index
    %22 = vector.load %arg4[%c1, %c0_15, %c0_16] : memref<4x128x128xf32, #tpu.memory_space<vmem>>, vector<1x128x128xf32>
    %23 = vector.shape_cast %22 : vector<1x128x128xf32> to vector<128x128xf32>
    %cst_17 = arith.constant dense<0.000000e+00> : vector<256x128xf32>
    %24 = tpu.matmul %21, %23, %cst_17 {dimension_numbers = #tpu.dot_dimension_numbers<[1], [0], [0], [1], [0, 0, 1, 1], [], []>} : vector<256x128xf32>, vector<128x128xf32>, vector<256x128xf32> -> vector<256x128xf32>
    %c1_18 = arith.constant 1 : index
    %c0_19 = arith.constant 0 : index
    %25 = vector.load %arg5[%c1_18, %c0_19] : memref<4x128xf32, #tpu.memory_space<vmem>>, vector<1x128xf32>
    %26 = vector.broadcast %25 : vector<1x128xf32> to vector<256x128xf32>
    %27 = arith.addf %24, %26 : vector<256x128xf32>
    %cst_20 = arith.constant 0.000000e+00 : f32
    %28 = vector.broadcast %cst_20 : f32 to vector<256x128xf32>
    %29 = arith.cmpf oge, %27, %28 : vector<256x128xf32>
    %cst_21 = arith.constant 0.00999999977 : f32
    %30 = vector.broadcast %cst_21 : f32 to vector<256x128xf32>
    %31 = arith.mulf %30, %27 : vector<256x128xf32>
    %32 = arith.select %29, %27, %31 : vector<256x128xi1>, vector<256x128xf32>
    %c2 = arith.constant 2 : index
    %c0_22 = arith.constant 0 : index
    %c0_23 = arith.constant 0 : index
    %33 = vector.load %arg4[%c2, %c0_22, %c0_23] : memref<4x128x128xf32, #tpu.memory_space<vmem>>, vector<1x128x128xf32>
    %34 = vector.shape_cast %33 : vector<1x128x128xf32> to vector<128x128xf32>
    %cst_24 = arith.constant dense<0.000000e+00> : vector<256x128xf32>
    %35 = tpu.matmul %32, %34, %cst_24 {dimension_numbers = #tpu.dot_dimension_numbers<[1], [0], [0], [1], [0, 0, 1, 1], [], []>} : vector<256x128xf32>, vector<128x128xf32>, vector<256x128xf32> -> vector<256x128xf32>
    %c2_25 = arith.constant 2 : index
    %c0_26 = arith.constant 0 : index
    %36 = vector.load %arg5[%c2_25, %c0_26] : memref<4x128xf32, #tpu.memory_space<vmem>>, vector<1x128xf32>
    %37 = vector.broadcast %36 : vector<1x128xf32> to vector<256x128xf32>
    %38 = arith.addf %35, %37 : vector<256x128xf32>
    %cst_27 = arith.constant 0.000000e+00 : f32
    %39 = vector.broadcast %cst_27 : f32 to vector<256x128xf32>
    %40 = arith.cmpf oge, %38, %39 : vector<256x128xf32>
    %cst_28 = arith.constant 0.00999999977 : f32
    %41 = vector.broadcast %cst_28 : f32 to vector<256x128xf32>
    %42 = arith.mulf %41, %38 : vector<256x128xf32>
    %43 = arith.select %40, %38, %42 : vector<256x128xi1>, vector<256x128xf32>
    %c3 = arith.constant 3 : index
    %c0_29 = arith.constant 0 : index
    %c0_30 = arith.constant 0 : index
    %44 = vector.load %arg4[%c3, %c0_29, %c0_30] : memref<4x128x128xf32, #tpu.memory_space<vmem>>, vector<1x128x128xf32>
    %45 = vector.shape_cast %44 : vector<1x128x128xf32> to vector<128x128xf32>
    %cst_31 = arith.constant dense<0.000000e+00> : vector<256x128xf32>
    %46 = tpu.matmul %43, %45, %cst_31 {dimension_numbers = #tpu.dot_dimension_numbers<[1], [0], [0], [1], [0, 0, 1, 1], [], []>} : vector<256x128xf32>, vector<128x128xf32>, vector<256x128xf32> -> vector<256x128xf32>
    %c3_32 = arith.constant 3 : index
    %c0_33 = arith.constant 0 : index
    %47 = vector.load %arg5[%c3_32, %c0_33] : memref<4x128xf32, #tpu.memory_space<vmem>>, vector<1x128xf32>
    %48 = vector.broadcast %47 : vector<1x128xf32> to vector<256x128xf32>
    %49 = arith.addf %46, %48 : vector<256x128xf32>
    %cst_34 = arith.constant 0.000000e+00 : f32
    %50 = vector.broadcast %cst_34 : f32 to vector<256x128xf32>
    %51 = arith.cmpf oge, %49, %50 : vector<256x128xf32>
    %cst_35 = arith.constant 0.00999999977 : f32
    %52 = vector.broadcast %cst_35 : f32 to vector<256x128xf32>
    %53 = arith.mulf %52, %49 : vector<256x128xf32>
    %54 = arith.select %51, %49, %53 : vector<256x128xi1>, vector<256x128xf32>
    %c0_36 = arith.constant 0 : index
    %c0_37 = arith.constant 0 : index
    %55 = vector.load %arg6[%c0_36, %c0_37] : memref<128x128xf32, #tpu.memory_space<vmem>>, vector<128x128xf32>
    %cst_38 = arith.constant dense<0.000000e+00> : vector<256x128xf32>
    %56 = tpu.matmul %54, %55, %cst_38 {dimension_numbers = #tpu.dot_dimension_numbers<[1], [0], [0], [1], [0, 0, 1, 1], [], []>} : vector<256x128xf32>, vector<128x128xf32>, vector<256x128xf32> -> vector<256x128xf32>
    %c0_39 = arith.constant 0 : index
    %c0_40 = arith.constant 0 : index
    %57 = vector.load %arg7[%c0_39, %c0_40] : memref<1x128xf32, #tpu.memory_space<vmem>>, vector<1x128xf32>
    %58 = vector.broadcast %57 : vector<1x128xf32> to vector<256x128xf32>
    %59 = arith.addf %56, %58 : vector<256x128xf32>
    %c0_41 = arith.constant 0 : index
    %c0_42 = arith.constant 0 : index
    %60 = vector.load %arg8[%c0_41, %c0_42] : memref<256x128xf32, #tpu.memory_space<vmem>>, vector<256x128xf32>
    tpu.vector_store %arg8[%c0_41, %c0_42], %59 {strides = array<i32>} : memref<256x128xf32, #tpu.memory_space<vmem>>, vector<256x128xf32>,
    return
  }
  func.func @transform_0(%arg0: i32) -> (i32, i32) {
    %c0_i32 = arith.constant 0 : i32
    %c0_i32_0 = arith.constant 0 : i32
    return %arg0, %c0_i32 : i32, i32
  }
  func.func @transform_1(%arg0: i32) -> (i32, i32) {
    %c0_i32 = arith.constant 0 : i32
    %c0_i32_0 = arith.constant 0 : i32
    %c0_i32_1 = arith.constant 0 : i32
    return %c0_i32, %c0_i32_0 : i32, i32
  }
  func.func @transform_2(%arg0: i32) -> (i32, i32) {
    %c0_i32 = arith.constant 0 : i32
    %c0_i32_0 = arith.constant 0 : i32
    %c0_i32_1 = arith.constant 0 : i32
    return %c0_i32, %c0_i32_0 : i32, i32
  }
  func.func @transform_3(%arg0: i32) -> (i32, i32, i32) {
    %c0_i32 = arith.constant 0 : i32
    %c0_i32_0 = arith.constant 0 : i32
    %c0_i32_1 = arith.constant 0 : i32
    %c0_i32_2 = arith.constant 0 : i32
    return %c0_i32, %c0_i32_0, %c0_i32_1 : i32, i32, i32
  }
  func.func @transform_4(%arg0: i32) -> (i32, i32) {
    %c0_i32 = arith.constant 0 : i32
    %c0_i32_0 = arith.constant 0 : i32
    %c0_i32_1 = arith.constant 0 : i32
    return %c0_i32, %c0_i32_0 : i32, i32
  }
  func.func @transform_5(%arg0: i32) -> (i32, i32) {
    %c0_i32 = arith.constant 0 : i32
    %c0_i32_0 = arith.constant 0 : i32
    %c0_i32_1 = arith.constant 0 : i32
    return %c0_i32, %c0_i32_0 : i32, i32
  }
  func.func @transform_6(%arg0: i32) -> (i32, i32) {
    %c0_i32 = arith.constant 0 : i32
    %c0_i32_0 = arith.constant 0 : i32
    %c0_i32_1 = arith.constant 0 : i32
    return %c0_i32, %c0_i32_0 : i32, i32
  }
  func.func @transform_7(%arg0: i32) -> (i32, i32) {
    %c0_i32 = arith.constant 0 : i32
    %c0_i32_0 = arith.constant 0 : i32
    return %arg0, %c0_i32 : i32, i32
  }
}

</mosaic_0001>

<bundles_post_ra>
// kernel: forward.1
= control target key start
LH: loop header
LB: loop body
LE: loop exit
PB: predicated region body
PF: predicated region fallthrough
CT: control target
= control target key end

     0   :  { %12 = vsyncpa [#allocation3], 0  ;;  %s2984_s24 = smov [#allocation2]   ;;  %s3602_s0 = inlined_call_operand.vmem [shape: f32[256,32], index: 0, kind: input, shape index: {}]   ;;  %s3603_s1 = inlined_call_operand.vmem [shape: f32[32,128], index: 1, kind: input, shape index: {}]   ;;  %s3604_s2 = inlined_call_operand.vmem [shape: f32[1,128], index: 2, kind: input, shape index: {}, may-alias: {2,6}]   ;;  %s3605_s3 = inlined_call_operand.hbm [shape: f32[4,128,128], index: 3, kind: input, shape index: {}]   ;;  %s3606_s4 = inlined_call_operand.vmem [shape: f32[4,128], index: 4, kind: input, shape index: {}]   ;;  %s3607_s5 = inlined_call_operand.vmem [shape: f32[128,128], index: 5, kind: input, shape index: {}]   ;;  %s3608_s6 = inlined_call_operand.vmem [shape: f32[1,128], index: 6, kind: input, shape index: {}, may-alias: {2,6}]   ;;  %s3609_s7 = inlined_call_operand.vmem [shape: f32[256,128], index: 7, kind: output, shape index: {}]  }
   0x1   :  { %s24_s25 = sshll.u32 %s2984_s24, 4  ;;  %s25_s25 = int_to_ptr.vmem [resolvable:$true] %s24_s25 }
   0x2   :  { %s2970_s26 = scalar_lea.vmem %s25_s25, 8192  ;;  %p2975_p1 = scmp.lt.s32.totalorder %s25_s25, %s25_s25 }
   0x3   :  { %p2971_p0 = scmp.ne.s32.totalorder %s25_s25, %s2970_s26  ;;  %p2976_p2 = scmp.lt.s32.totalorder %s2970_s26, %s2970_s26 }
   0x5   :  { %p2977_p3 = por %p2976_p2, %p2975_p1 }
   0x7   :  { %p2978_p4 = pnand %p2977_p3, %p2971_p0 }
   0x9   :  { %2981 = shalt.err (!%p2978_p4)
}
   0xa   :  { %s2985_s27 = smov 128   ;;  %s2986_s28 = smov 8  }
   0xb   :  { %30 = dma.hbm_to_vmem [thread:$0]  %s3605_s3, 8192, %s25_s25, [#allocation3], %s2985_s27, %s2985_s27, %s2986_s28  }
   0xc   :  { %2982 = dma.done.wait [#allocation3], 8192  }
   0xd   :  { %2983 = vsyncadd [#allocation3], 4294959104  ;;  %vm83_vm0 = vcmask 261120   ;;  %v75_v0 = vld [vmem:[%s3603_s1 + $0x18] sm:$0xff]  ;;  %v74_v1 = vld [vmem:[%s3603_s1 + $0x10] sm:$0xff] }
   0xe   :  { %2471 = vmatprep.subr.mxu0 %v75_v0  ;;  %v40_v2 = vld [vmem:[%s3602_s0] sm:$0xff]  ;;  %v73_v3 = vld [vmem:[%s3603_s1 + $0x8] sm:$0xff]  ;;  %v42_v6 = vld [vmem:[%s3602_s0 + $0x10] sm:$0xff] }
   0xf   :  { %2472 = vmatpush3.msra.mxu0 %v75_v0  ;;  %2479 = vmatprep.mubr.msk.f32.mxu0 %vm83_vm0, %v40_v2  ;;  %v72_v4 = vld [vmem:[%s3603_s1] sm:$0xff]  ;;  %v41_v5 = vld [vmem:[%s3602_s0 + $0x8] sm:$0xff]  ;;  %v43_v7 = vld [vmem:[%s3602_s0 + $0x18] sm:$0xff] }
  0x10   :  { %2473 = vmatprep.subr.mxu0 %v74_v1  ;;  %v44_v8 = vld [vmem:[%s3602_s0 + $0x20] sm:$0xff]  ;;  %v516_v9 = vld [vmem:[#allocation2 + $0x78] sm:$0xff]  ;;  %v515_v10 = vld [vmem:[#allocation2 + $0x70] sm:$0xff] }
  0x11   :  { %2474 = vmatpush3.msra.mxu0 %v74_v1  ;;  %2527 = vmatprep.subr.mxu1 %v516_v9  ;;  %v45_v11 = vld [vmem:[%s3602_s0 + $0x28] sm:$0xff]  ;;  %v46_v13 = vld [vmem:[%s3602_s0 + $0x30] sm:$0xff]  ;;  %v513_v14 = vld [vmem:[#allocation2 + $0x60] sm:$0xff] }
  0x12   :  { %2475 = vmatprep.subr.mxu0 %v73_v3  ;;  %2528 = vmatpush3.msra.mxu1 %v516_v9  ;;  %v514_v12 = vld [vmem:[#allocation2 + $0x68] sm:$0xff]  ;;  %v47_v15 = vld [vmem:[%s3602_s0 + $0x38] sm:$0xff]  ;;  %v48_v17 = vld [vmem:[%s3602_s0 + $0x40] sm:$0xff] }
  0x13   :  { %2476 = vmatpush3.msra.mxu0 %v73_v3  ;;  %2529 = vmatprep.subr.mxu1 %v515_v10  ;;  %v512_v16 = vld [vmem:[#allocation2 + $0x58] sm:$0xff]  ;;  %v511_v18 = vld [vmem:[#allocation2 + $0x50] sm:$0xff]  ;;  %v49_v19 = vld [vmem:[%s3602_s0 + $0x48] sm:$0xff] }
  0x14   :  { %2477 = vmatprep.subr.mxu0 %v72_v4  ;;  %2530 = vmatpush3.msra.mxu1 %v515_v10  ;;  %v510_v20 = vld [vmem:[#allocation2 + $0x48] sm:$0xff]  ;;  %v50_v21 = vld [vmem:[%s3602_s0 + $0x50] sm:$0xff]  ;;  %v509_v22 = vld [vmem:[#allocation2 + $0x40] sm:$0xff] }
  0x15   :  { %2478 = vmatpush3.msra.mxu0 %v72_v4  ;;  %2531 = vmatprep.subr.mxu1 %v514_v12  ;;  %v51_v23 = vld [vmem:[%s3602_s0 + $0x58] sm:$0xff]  ;;  %v52_v25 = vld [vmem:[%s3602_s0 + $0x60] sm:$0xff]  ;;  %v507_v26 = vld [vmem:[#allocation2 + $0x30] sm:$0xff] }
  0x16   :  { %2480 = vmatmul.mubr.msk.f32.vlgmr.msra.gmra.mxu0 %vm83_vm0, %v41_v5  ;;  %2532 = vmatpush3.msra.mxu1 %v514_v12  ;;  %v508_v24 = vld [vmem:[#allocation2 + $0x38] sm:$0xff]  ;;  %v53_v27 = vld [vmem:[%s3602_s0 + $0x68] sm:$0xff]  ;;  %v54_v29 = vld [vmem:[%s3602_s0 + $0x70] sm:$0xff] }
  0x17   :  { %2482 = vmatprep.mubr.msk.f32.mxu0 %vm83_vm0, %v42_v6  ;;  %2533 = vmatprep.subr.mxu1 %v513_v14  ;;  %v506_v28 = vld [vmem:[#allocation2 + $0x28] sm:$0xff]  ;;  %v505_v30 = vld [vmem:[#allocation2 + $0x20] sm:$0xff]  ;;  %v55_v31 = vld [vmem:[%s3602_s0 + $0x78] sm:$0xff] }
  0x18   :  { %2534 = vmatpush3.msra.mxu1 %v513_v14  ;;  %v56_v32 = vld [vmem:[%s3602_s0 + $0x80] sm:$0xff]  ;;  %v57_v33 = vld [vmem:[%s3602_s0 + $0x88] sm:$0xff]  ;;  %v58_v34 = vld [vmem:[%s3602_s0 + $0x90] sm:$0xff] }
  0x19   :  { %2535 = vmatprep.subr.mxu1 %v512_v16  ;;  %v59_v35 = vld [vmem:[%s3602_s0 + $0x98] sm:$0xff]  ;;  %v60_v36 = vld [vmem:[%s3602_s0 + $0xa0] sm:$0xff]  ;;  %v61_v37 = vld [vmem:[%s3602_s0 + $0xa8] sm:$0xff] }
  0x1a   :  { %2483 = vmatmul.mubr.msk.f32.gmra.mxu0 %vm83_vm0, %v43_v7  ;;  %2536 = vmatpush3.msra.mxu1 %v512_v16  ;;  %v62_v38 = vld [vmem:[%s3602_s0 + $0xb0] sm:$0xff]  ;;  %v63_v39 = vld [vmem:[%s3602_s0 + $0xb8] sm:$0xff]  ;;  %v64_v40 = vld [vmem:[%s3602_s0 + $0xc0] sm:$0xff] }
  0x1b   :  { %2485 = vmatprep.mubr.msk.f32.mxu0 %vm83_vm0, %v44_v8  ;;  %2537 = vmatprep.subr.mxu1 %v511_v18  ;;  %v65_v41 = vld [vmem:[%s3602_s0 + $0xc8] sm:$0xff]  ;;  %v66_v42 = vld [vmem:[%s3602_s0 + $0xd0] sm:$0xff]  ;;  %v67_v43 = vld [vmem:[%s3602_s0 + $0xd8] sm:$0xff] }
  0x1c   :  { %2538 = vmatpush3.msra.mxu1 %v511_v18  ;;  %v68_v44 = vld [vmem:[%s3602_s0 + $0xe0] sm:$0xff]  ;;  %v69_v45 = vld [vmem:[%s3602_s0 + $0xe8] sm:$0xff]  ;;  %v70_v46 = vld [vmem:[%s3602_s0 + $0xf0] sm:$0xff] }
  0x1d   :  { %2539 = vmatprep.subr.mxu1 %v510_v20  ;;  %v71_v47 = vld [vmem:[%s3602_s0 + $0xf8] sm:$0xff]  ;;  %v503_v49 = vld [vmem:[#allocation2 + $0x10] sm:$0xff]  ;;  %v502_v50 = vld [vmem:[#allocation2 + $0x8] sm:$0xff] }
  0x1e   :  { %2486 = vmatmul.mubr.msk.f32.gmra.mxu0 %vm83_vm0, %v45_v11  ;;  %2540 = vmatpush3.msra.mxu1 %v510_v20  ;;  %v504_v48 = vld [vmem:[#allocation2 + $0x18] sm:$0xff]  ;;  %v501_v51 = vld [vmem:[#allocation2] sm:$0xff]  ;;  %v858_v53 = vld [vmem:[#allocation2 + $0xf0] sm:$0xff] }
  0x1f   :  { %2488 = vmatprep.mubr.msk.f32.mxu0 %vm83_vm0, %v46_v13  ;;  %2541 = vmatprep.subr.mxu1 %v509_v22  ;;  %v859_v52 = vld [vmem:[#allocation2 + $0xf8] sm:$0xff]  ;;  %v857_v54 = vld [vmem:[#allocation2 + $0xe8] sm:$0xff]  ;;  %v856_v55 = vld [vmem:[#allocation2 + $0xe0] sm:$0xff] }
  0x20   :  { %2542 = vmatpush3.msra.mxu1 %v509_v22  ;;  %2607 = vmatprep.subr.mxu0 %v859_v52  ;;  %v855_v56 = vld [vmem:[#allocation2 + $0xd8] sm:$0xff]  ;;  %v854_v57 = vld [vmem:[#allocation2 + $0xd0] sm:$0xff]  ;;  %v853_v58 = vld [vmem:[#allocation2 + $0xc8] sm:$0xff] }
  0x21   :  { %2543 = vmatprep.subr.mxu1 %v508_v24  ;;  %2608 = vmatpush3.msra.mxu0 %v859_v52  ;;  %v852_v59 = vld [vmem:[#allocation2 + $0xc0] sm:$0xff]  ;;  %v851_v60 = vld [vmem:[#allocation2 + $0xb8] sm:$0xff]  ;;  %v850_v61 = vld [vmem:[#allocation2 + $0xb0] sm:$0xff] }
  0x22   :  { %2489 = vmatmul.mubr.msk.f32.gmra.mxu0 %vm83_vm0, %v47_v15  ;;  %2544 = vmatpush3.msra.mxu1 %v508_v24  ;;  %v849_v62 = vld [vmem:[#allocation2 + $0xa8] sm:$0xff]  ;;  %v848_v63 = vld [vmem:[#allocation2 + $0xa0] sm:$0xff]  ;;  %v847_v0 = vld [vmem:[#allocation2 + $0x98] sm:$0xff] }
  0x23   :  { %2491 = vmatprep.mubr.msk.f32.mxu0 %vm83_vm0, %v48_v17  ;;  %2545 = vmatprep.subr.mxu1 %v507_v26  ;;  %v846_v1 = vld [vmem:[#allocation2 + $0x90] sm:$0xff]  ;;  %v3173_v2 = vld [vmem:[%s3604_s2] ss:$0 sm:$0xff] }
  0x24   :  { %2546 = vmatpush3.msra.mxu1 %v507_v26  ;;  %2609 = vmatprep.subr.mxu0 %v858_v53 }
  0x25   :  { %2547 = vmatprep.subr.mxu1 %v506_v28  ;;  %2610 = vmatpush3.msra.mxu0 %v858_v53 }
  0x26   :  { %2492 = vmatmul.mubr.msk.f32.gmra.mxu0 %vm83_vm0, %v49_v19  ;;  %2548 = vmatpush3.msra.mxu1 %v506_v28 }
  0x27   :  { %2494 = vmatprep.mubr.msk.f32.mxu0 %vm83_vm0, %v50_v21  ;;  %2549 = vmatprep.subr.mxu1 %v505_v30 }
  0x28   :  { %2550 = vmatpush3.msra.mxu1 %v505_v30  ;;  %2611 = vmatprep.subr.mxu0 %v857_v54 }
  0x29   :  { %2551 = vmatprep.subr.mxu1 %v504_v48  ;;  %2612 = vmatpush3.msra.mxu0 %v857_v54 }
  0x2a   :  { %2495 = vmatmul.mubr.msk.f32.gmra.mxu0 %vm83_vm0, %v51_v23  ;;  %2552 = vmatpush3.msra.mxu1 %v504_v48 }
  0x2b   :  { %2497 = vmatprep.mubr.msk.f32.mxu0 %vm83_vm0, %v52_v25  ;;  %2553 = vmatprep.subr.mxu1 %v503_v49 }
  0x2c   :  { %2554 = vmatpush3.msra.mxu1 %v503_v49  ;;  %2613 = vmatprep.subr.mxu0 %v856_v55 }
  0x2d   :  { %2555 = vmatprep.subr.mxu1 %v502_v50  ;;  %2614 = vmatpush3.msra.mxu0 %v856_v55 }
  0x2e   :  { %2498 = vmatmul.mubr.msk.f32.gmra.mxu0 %vm83_vm0, %v53_v27  ;;  %2556 = vmatpush3.msra.mxu1 %v502_v50 }
  0x2f   :  { %2500 = vmatprep.mubr.msk.f32.mxu0 %vm83_vm0, %v54_v29  ;;  %2557 = vmatprep.subr.mxu1 %v501_v51 }
  0x30   :  { %2558 = vmatpush3.msra.mxu1 %v501_v51  ;;  %2615 = vmatprep.subr.mxu0 %v855_v56 }
  0x31   :  { %2616 = vmatpush3.msra.mxu0 %v855_v56 }
  0x32   :  { %2501 = vmatmul.mubr.msk.f32.gmra.mxu0 %vm83_vm0, %v55_v31  ;;  %2617 = vmatprep.subr.mxu0 %v854_v57 }
  0x33   :  { %2503 = vmatprep.mubr.msk.f32.mxu0 %vm83_vm0, %v56_v32  ;;  %2618 = vmatpush3.msra.mxu0 %v854_v57 }
  0x34   :  { %2619 = vmatprep.subr.mxu0 %v853_v58 }
  0x35   :  { %2620 = vmatpush3.msra.mxu0 %v853_v58 }
  0x36   :  { %2504 = vmatmul.mubr.msk.f32.gmra.mxu0 %vm83_vm0, %v57_v33  ;;  %2621 = vmatprep.subr.mxu0 %v852_v59 }
  0x37   :  { %2506 = vmatprep.mubr.msk.f32.mxu0 %vm83_vm0, %v58_v34  ;;  %2622 = vmatpush3.msra.mxu0 %v852_v59 }
  0x38   :  { %2623 = vmatprep.subr.mxu0 %v851_v60 }
  0x39   :  { %2624 = vmatpush3.msra.mxu0 %v851_v60 }
  0x3a   :  { %2507 = vmatmul.mubr.msk.f32.gmra.mxu0 %vm83_vm0, %v59_v35  ;;  %2625 = vmatprep.subr.mxu0 %v850_v61 }
  0x3b   :  { %2509 = vmatprep.mubr.msk.f32.mxu0 %vm83_vm0, %v60_v36  ;;  %2626 = vmatpush3.msra.mxu0 %v850_v61 }
  0x3c   :  { %2627 = vmatprep.subr.mxu0 %v849_v62 }
  0x3d   :  { %2628 = vmatpush3.msra.mxu0 %v849_v62 }
  0x3e   :  { %2510 = vmatmul.mubr.msk.f32.gmra.mxu0 %vm83_vm0, %v61_v37  ;;  %2629 = vmatprep.subr.mxu0 %v848_v63 }
  0x3f   :  { %2512 = vmatprep.mubr.msk.f32.mxu0 %vm83_vm0, %v62_v38  ;;  %2630 = vmatpush3.msra.mxu0 %v848_v63 }
  0x40   :  { %2631 = vmatprep.subr.mxu0 %v847_v0 }
  0x41   :  { %2632 = vmatpush3.msra.mxu0 %v847_v0 }
  0x42   :  { %2513 = vmatmul.mubr.msk.f32.gmra.mxu0 %vm83_vm0, %v63_v39  ;;  %2633 = vmatprep.subr.mxu0 %v846_v1 }
  0x43   :  { %2515 = vmatprep.mubr.msk.f32.mxu0 %vm83_vm0, %v64_v40  ;;  %2634 = vmatpush3.msra.mxu0 %v846_v1 }
  0x46   :  { %2516 = vmatmul.mubr.msk.f32.gmra.mxu0 %vm83_vm0, %v65_v41 }
  0x47   :  { %2518 = vmatprep.mubr.msk.f32.mxu0 %vm83_vm0, %v66_v42 }
  0x4a   :  { %2519 = vmatmul.mubr.msk.f32.gmra.mxu0 %vm83_vm0, %v67_v43 }
  0x4b   :  { %2521 = vmatprep.mubr.msk.f32.mxu0 %vm83_vm0, %v68_v44 }
  0x4e   :  { %2522 = vmatmul.mubr.msk.f32.gmra.mxu0 %vm83_vm0, %v69_v45 }
  0x4f   :  { %2524 = vmatprep.mubr.msk.f32.mxu0 %vm83_vm0, %v70_v46 }
  0x52   :  { %2525 = vmatmul.mubr.msk.f32.gmra.mxu0 %vm83_vm0, %v71_v47 }
  0xd6   :  { %v2481_v3 = vpop.f32.mrf.mxu0 }
  0xd7   :  { %v252_v4 = vadd.f32 %v2481_v3, %v3173_v2 }
  0xd8   :  { %v246_v5 = vpop.f32.mrf.mxu0 }
  0xd9   :  { %v247_v6 = vadd.f32 %v3173_v2, %v246_v5  ;;  %v438_v7 = vmul.f32 0.02, %v252_v4  ;;  %vm406_vm2 = vcmp.ge.f32.partialorder %v252_v4, 0.0 }
  0xda   :  { %v2484_v8 = vpop.f32.mrf.mxu0 }
  0xdb   :  { %v262_v9 = vadd.f32 %v2484_v8, %v3173_v2  ;;  %vm405_vm1 = vcmp.ge.f32.partialorder %v247_v6, 0.0  ;;  %v437_v10 = vmul.f32 0.02, %v247_v6  ;;  %v470_v16 = vsel %vm406_vm2, %v252_v4, %v438_v7 }
  0xdc   :  { %v256_v11 = vpop.f32.mrf.mxu0 }
  0xdd   :  { %v257_v12 = vadd.f32 %v3173_v2, %v256_v11  ;;  %v469_v13 = vsel %vm405_vm1, %v247_v6, %v437_v10  ;;  %v440_v14 = vmul.f32 0.02, %v262_v9  ;;  %vm408_vm4 = vcmp.ge.f32.partialorder %v262_v9, 0.0 }
  0xde   :  { %v2487_v15 = vpop.f32.mrf.mxu0  ;;  %2559 = vmatprep.mubr.f32.mxu1 %v469_v13 }
  0xdf   :  { %v439_v17 = vmul.f32 0.02, %v257_v12  ;;  %v272_v18 = vadd.f32 %v2487_v15, %v3173_v2  ;;  %2560 = vmatmul.mubr.f32.vlgmr.msra.gmra.mxu1 %v470_v16  ;;  %vm407_vm3 = vcmp.ge.f32.partialorder %v257_v12, 0.0  ;;  %v472_v24 = vsel %vm408_vm4, %v262_v9, %v440_v14 }
  0xe0   :  { %v266_v19 = vpop.f32.mrf.mxu0 }
  0xe1   :  { %v267_v20 = vadd.f32 %v3173_v2, %v266_v19  ;;  %v471_v21 = vsel %vm407_vm3, %v257_v12, %v439_v17  ;;  %v442_v22 = vmul.f32 0.02, %v272_v18  ;;  %vm410_vm6 = vcmp.ge.f32.partialorder %v272_v18, 0.0 }
  0xe2   :  { %v2490_v23 = vpop.f32.mrf.mxu0  ;;  %2562 = vmatprep.mubr.f32.mxu1 %v471_v21 }
  0xe3   :  { %v441_v25 = vmul.f32 0.02, %v267_v20  ;;  %v282_v26 = vadd.f32 %v2490_v23, %v3173_v2  ;;  %2563 = vmatmul.mubr.f32.gmra.mxu1 %v472_v24  ;;  %vm409_vm5 = vcmp.ge.f32.partialorder %v267_v20, 0.0  ;;  %v474_v32 = vsel %vm410_vm6, %v272_v18, %v442_v22 }
  0xe4   :  { %v276_v27 = vpop.f32.mrf.mxu0 }
  0xe5   :  { %v277_v28 = vadd.f32 %v3173_v2, %v276_v27  ;;  %v473_v29 = vsel %vm409_vm5, %v267_v20, %v441_v25  ;;  %v444_v30 = vmul.f32 0.02, %v282_v26  ;;  %vm412_vm8 = vcmp.ge.f32.partialorder %v282_v26, 0.0 }
  0xe6   :  { %v2493_v31 = vpop.f32.mrf.mxu0  ;;  %2565 = vmatprep.mubr.f32.mxu1 %v473_v29 }
  0xe7   :  { %v443_v33 = vmul.f32 0.02, %v277_v28  ;;  %v292_v34 = vadd.f32 %v2493_v31, %v3173_v2  ;;  %2566 = vmatmul.mubr.f32.gmra.mxu1 %v474_v32  ;;  %vm411_vm7 = vcmp.ge.f32.partialorder %v277_v28, 0.0  ;;  %v476_v40 = vsel %vm412_vm8, %v282_v26, %v444_v30 }
  0xe8   :  { %v286_v35 = vpop.f32.mrf.mxu0 }
  0xe9   :  { %v287_v36 = vadd.f32 %v3173_v2, %v286_v35  ;;  %v475_v37 = vsel %vm411_vm7, %v277_v28, %v443_v33  ;;  %v446_v38 = vmul.f32 0.02, %v292_v34  ;;  %vm414_vm10 = vcmp.ge.f32.partialorder %v292_v34, 0.0 }
  0xea   :  { %v2496_v39 = vpop.f32.mrf.mxu0  ;;  %2568 = vmatprep.mubr.f32.mxu1 %v475_v37 }
  0xeb   :  { %v445_v41 = vmul.f32 0.02, %v287_v36  ;;  %v302_v42 = vadd.f32 %v2496_v39, %v3173_v2  ;;  %2569 = vmatmul.mubr.f32.gmra.mxu1 %v476_v40  ;;  %vm413_vm9 = vcmp.ge.f32.partialorder %v287_v36, 0.0  ;;  %v478_v48 = vsel %vm414_vm10, %v292_v34, %v446_v38 }
  0xec   :  { %v296_v43 = vpop.f32.mrf.mxu0 }
  0xed   :  { %v297_v44 = vadd.f32 %v3173_v2, %v296_v43  ;;  %v477_v45 = vsel %vm413_vm9, %v287_v36, %v445_v41  ;;  %v448_v46 = vmul.f32 0.02, %v302_v42  ;;  %vm416_vm12 = vcmp.ge.f32.partialorder %v302_v42, 0.0 }
  0xee   :  { %v2499_v47 = vpop.f32.mrf.mxu0  ;;  %2571 = vmatprep.mubr.f32.mxu1 %v477_v45 }
  0xef   :  { %v447_v49 = vmul.f32 0.02, %v297_v44  ;;  %v312_v50 = vadd.f32 %v2499_v47, %v3173_v2  ;;  %2572 = vmatmul.mubr.f32.gmra.mxu1 %v478_v48  ;;  %vm415_vm11 = vcmp.ge.f32.partialorder %v297_v44, 0.0  ;;  %v480_v56 = vsel %vm416_vm12, %v302_v42, %v448_v46 }
  0xf0   :  { %v306_v51 = vpop.f32.mrf.mxu0 }
  0xf1   :  { %v307_v52 = vadd.f32 %v3173_v2, %v306_v51  ;;  %v479_v53 = vsel %vm415_vm11, %v297_v44, %v447_v49  ;;  %v450_v54 = vmul.f32 0.02, %v312_v50  ;;  %vm418_vm14 = vcmp.ge.f32.partialorder %v312_v50, 0.0 }
  0xf2   :  { %v2502_v55 = vpop.f32.mrf.mxu0  ;;  %2574 = vmatprep.mubr.f32.mxu1 %v479_v53 }
  0xf3   :  { %v449_v57 = vmul.f32 0.02, %v307_v52  ;;  %v322_v58 = vadd.f32 %v2502_v55, %v3173_v2  ;;  %2575 = vmatmul.mubr.f32.gmra.mxu1 %v480_v56  ;;  %vm417_vm13 = vcmp.ge.f32.partialorder %v307_v52, 0.0  ;;  %v482_v0 = vsel %vm418_vm14, %v312_v50, %v450_v54 }
  0xf4   :  { %v316_v59 = vpop.f32.mrf.mxu0 }
  0xf5   :  { %v317_v60 = vadd.f32 %v3173_v2, %v316_v59  ;;  %v481_v61 = vsel %vm417_vm13, %v307_v52, %v449_v57  ;;  %v452_v62 = vmul.f32 0.02, %v322_v58  ;;  %vm420_vm0 = vcmp.ge.f32.partialorder %v322_v58, 0.0 }
  0xf6   :  { %v2505_v63 = vpop.f32.mrf.mxu0  ;;  %2577 = vmatprep.mubr.f32.mxu1 %v481_v61 }
  0xf7   :  { %v451_v1 = vmul.f32 0.02, %v317_v60  ;;  %v332_v3 = vadd.f32 %v2505_v63, %v3173_v2  ;;  %2578 = vmatmul.mubr.f32.gmra.mxu1 %v482_v0  ;;  %vm419_vm15 = vcmp.ge.f32.partialorder %v317_v60, 0.0  ;;  %v484_v9 = vsel %vm420_vm0, %v322_v58, %v452_v62 }
  0xf8   :  { %v326_v4 = vpop.f32.mrf.mxu0 }
  0xf9   :  { %v327_v5 = vadd.f32 %v3173_v2, %v326_v4  ;;  %v483_v6 = vsel %vm419_vm15, %v317_v60, %v451_v1  ;;  %v454_v7 = vmul.f32 0.02, %v332_v3  ;;  %vm422_vm2 = vcmp.ge.f32.partialorder %v332_v3, 0.0 }
  0xfa   :  { %v2508_v8 = vpop.f32.mrf.mxu0  ;;  %2580 = vmatprep.mubr.f32.mxu1 %v483_v6  ;;  %v844_v6 = vld [vmem:[#allocation2 + $0x80] sm:$0xff] }
  0xfb   :  { %v453_v10 = vmul.f32 0.02, %v327_v5  ;;  %v342_v11 = vadd.f32 %v2508_v8, %v3173_v2  ;;  %2581 = vmatmul.mubr.f32.gmra.mxu1 %v484_v9  ;;  %vm421_vm1 = vcmp.ge.f32.partialorder %v327_v5, 0.0  ;;  %v486_v17 = vsel %vm422_vm2, %v332_v3, %v454_v7  ;;  %v1202_v7 = vld [vmem:[#allocation2 + $0x178] sm:$0xff]  ;;  %v1200_v8 = vld [vmem:[#allocation2 + $0x168] sm:$0xff]  ;;  %v1199_v9 = vld [vmem:[#allocation2 + $0x160] sm:$0xff] }
  0xfc   :  { %v336_v12 = vpop.f32.mrf.mxu0  ;;  %2687 = vmatprep.subr.mxu1 %v1202_v7 }
  0xfd   :  { %v337_v13 = vadd.f32 %v3173_v2, %v336_v12  ;;  %v485_v14 = vsel %vm421_vm1, %v327_v5, %v453_v10  ;;  %v456_v15 = vmul.f32 0.02, %v342_v11  ;;  %vm424_vm4 = vcmp.ge.f32.partialorder %v342_v11, 0.0  ;;  %v845_v5 = vld [vmem:[#allocation2 + $0x88] sm:$0xff]  ;;  %2688 = vmatpush3.msra.mxu1 %v1202_v7  ;;  %v1198_v10 = vld [vmem:[#allocation2 + $0x158] sm:$0xff] }
  0xfe   :  { %v2511_v16 = vpop.f32.mrf.mxu0  ;;  %2583 = vmatprep.mubr.f32.mxu1 %v485_v14  ;;  %2635 = vmatprep.subr.mxu0 %v845_v5  ;;  %v1196_v12 = vld [vmem:[#allocation2 + $0x148] sm:$0xff]  ;;  %v1194_v14 = vld [vmem:[#allocation2 + $0x138] sm:$0xff] }
  0xff   :  { %v455_v18 = vmul.f32 0.02, %v337_v13  ;;  %v352_v19 = vadd.f32 %v2511_v16, %v3173_v2  ;;  %2584 = vmatmul.mubr.f32.gmra.mxu1 %v486_v17  ;;  %vm423_vm3 = vcmp.ge.f32.partialorder %v337_v13, 0.0  ;;  %v488_v25 = vsel %vm424_vm4, %v342_v11, %v456_v15  ;;  %2636 = vmatpush3.msra.mxu0 %v845_v5  ;;  %v1197_v11 = vld [vmem:[#allocation2 + $0x150] sm:$0xff]  ;;  %v1192_v16 = vld [vmem:[#allocation2 + $0x128] sm:$0xff]  ;;  %v1191_v17 = vld [vmem:[#allocation2 + $0x120] sm:$0xff] }
 0x100   :  { %v346_v20 = vpop.f32.mrf.mxu0  ;;  %2637 = vmatprep.subr.mxu0 %v844_v6  ;;  %v1193_v15 = vld [vmem:[#allocation2 + $0x130] sm:$0xff] }
 0x101   :  { %v347_v21 = vadd.f32 %v3173_v2, %v346_v20  ;;  %v487_v22 = vsel %vm423_vm3, %v337_v13, %v455_v18  ;;  %v458_v23 = vmul.f32 0.02, %v352_v19  ;;  %vm426_vm6 = vcmp.ge.f32.partialorder %v352_v19, 0.0  ;;  %2638 = vmatpush3.msra.mxu0 %v844_v6  ;;  %v1195_v13 = vld [vmem:[#allocation2 + $0x140] sm:$0xff]  ;;  %v1190_v18 = vld [vmem:[#allocation2 + $0x118] sm:$0xff] }
 0x102   :  { %v2514_v24 = vpop.f32.mrf.mxu0  ;;  %2586 = vmatprep.mubr.f32.mxu1 %v487_v22  ;;  %v3210_v20 = vld [vmem:[%s3606_s4] ss:$0 sm:$0xff] }
 0x103   :  { %v457_v26 = vmul.f32 0.02, %v347_v21  ;;  %v362_v27 = vadd.f32 %v2514_v24, %v3173_v2  ;;  %2587 = vmatmul.mubr.f32.gmra.mxu1 %v488_v25  ;;  %vm425_vm5 = vcmp.ge.f32.partialorder %v347_v21, 0.0  ;;  %v490_v33 = vsel %vm426_vm6, %v352_v19, %v458_v23  ;;  %v1189_v19 = vld [vmem:[#allocation2 + $0x110] sm:$0xff] }
 0x104   :  { %v356_v28 = vpop.f32.mrf.mxu0 }
 0x105   :  { %v357_v29 = vadd.f32 %v3173_v2, %v356_v28  ;;  %v489_v30 = vsel %vm425_vm5, %v347_v21, %v457_v26  ;;  %v460_v31 = vmul.f32 0.02, %v362_v27  ;;  %vm428_vm8 = vcmp.ge.f32.partialorder %v362_v27, 0.0 }
 0x106   :  { %v2517_v32 = vpop.f32.mrf.mxu0  ;;  %2589 = vmatprep.mubr.f32.mxu1 %v489_v30 }
 0x107   :  { %v459_v34 = vmul.f32 0.02, %v357_v29  ;;  %v372_v35 = vadd.f32 %v2517_v32, %v3173_v2  ;;  %2590 = vmatmul.mubr.f32.gmra.mxu1 %v490_v33  ;;  %vm427_vm7 = vcmp.ge.f32.partialorder %v357_v29, 0.0  ;;  %v492_v41 = vsel %vm428_vm8, %v362_v27, %v460_v31 }
 0x108   :  { %v366_v36 = vpop.f32.mrf.mxu0 }
 0x109   :  { %v367_v37 = vadd.f32 %v3173_v2, %v366_v36  ;;  %v491_v38 = vsel %vm427_vm7, %v357_v29, %v459_v34  ;;  %v462_v39 = vmul.f32 0.02, %v372_v35  ;;  %vm430_vm10 = vcmp.ge.f32.partialorder %v372_v35, 0.0 }
 0x10a   :  { %v2520_v40 = vpop.f32.mrf.mxu0  ;;  %2592 = vmatprep.mubr.f32.mxu1 %v491_v38 }
 0x10b   :  { %v461_v42 = vmul.f32 0.02, %v367_v37  ;;  %v382_v43 = vadd.f32 %v2520_v40, %v3173_v2  ;;  %2593 = vmatmul.mubr.f32.gmra.mxu1 %v492_v41  ;;  %vm429_vm9 = vcmp.ge.f32.partialorder %v367_v37, 0.0  ;;  %v494_v49 = vsel %vm430_vm10, %v372_v35, %v462_v39 }
 0x10c   :  { %v376_v44 = vpop.f32.mrf.mxu0 }
 0x10d   :  { %v377_v45 = vadd.f32 %v3173_v2, %v376_v44  ;;  %v493_v46 = vsel %vm429_vm9, %v367_v37, %v461_v42  ;;  %v464_v47 = vmul.f32 0.02, %v382_v43  ;;  %vm432_vm12 = vcmp.ge.f32.partialorder %v382_v43, 0.0 }
 0x10e   :  { %v2523_v48 = vpop.f32.mrf.mxu0  ;;  %2595 = vmatprep.mubr.f32.mxu1 %v493_v46 }
 0x10f   :  { %v463_v50 = vmul.f32 0.02, %v377_v45  ;;  %v392_v51 = vadd.f32 %v2523_v48, %v3173_v2  ;;  %2596 = vmatmul.mubr.f32.gmra.mxu1 %v494_v49  ;;  %vm431_vm11 = vcmp.ge.f32.partialorder %v377_v45, 0.0  ;;  %v496_v57 = vsel %vm432_vm12, %v382_v43, %v464_v47 }
 0x110   :  { %v386_v52 = vpop.f32.mrf.mxu0 }
 0x111   :  { %v387_v53 = vadd.f32 %v3173_v2, %v386_v52  ;;  %v495_v54 = vsel %vm431_vm11, %v377_v45, %v463_v50  ;;  %v466_v55 = vmul.f32 0.02, %v392_v51  ;;  %vm434_vm14 = vcmp.ge.f32.partialorder %v392_v51, 0.0 }
 0x112   :  { %v2526_v56 = vpop.f32.mrf.mxu0  ;;  %2598 = vmatprep.mubr.f32.mxu1 %v495_v54 }
 0x113   :  { %v465_v58 = vmul.f32 0.02, %v387_v53  ;;  %v402_v59 = vadd.f32 %v2526_v56, %v3173_v2  ;;  %2599 = vmatmul.mubr.f32.gmra.mxu1 %v496_v57  ;;  %vm433_vm13 = vcmp.ge.f32.partialorder %v387_v53, 0.0  ;;  %v498_v0 = vsel %vm434_vm14, %v392_v51, %v466_v55 }
 0x114   :  { %v396_v60 = vpop.f32.mrf.mxu0 }
 0x115   :  { %v397_v61 = vadd.f32 %v3173_v2, %v396_v60  ;;  %v497_v62 = vsel %vm433_vm13, %v387_v53, %v465_v58  ;;  %v468_v63 = vmul.f32 0.02, %v402_v59  ;;  %vm436_vm0 = vcmp.ge.f32.partialorder %v402_v59, 0.0  ;;  %v1201_v2 = vld [vmem:[#allocation2 + $0x170] sm:$0xff] }
 0x116   :  { %2601 = vmatprep.mubr.f32.mxu1 %v497_v62  ;;  %2689 = vmatprep.subr.mxu1 %v1201_v2 }
 0x117   :  { %v467_v1 = vmul.f32 0.02, %v397_v61  ;;  %2602 = vmatmul.mubr.f32.gmra.mxu1 %v498_v0  ;;  %vm435_vm15 = vcmp.ge.f32.partialorder %v397_v61, 0.0  ;;  %v500_v4 = vsel %vm436_vm0, %v402_v59, %v468_v63 }
 0x118   :  { %2690 = vmatpush3.msra.mxu1 %v1201_v2 }
 0x119   :  { %v499_v3 = vsel %vm435_vm15, %v397_v61, %v467_v1  ;;  %2691 = vmatprep.subr.mxu1 %v1200_v8 }
 0x11a   :  { %2604 = vmatprep.mubr.f32.mxu1 %v499_v3  ;;  %2692 = vmatpush3.msra.mxu1 %v1200_v8 }
 0x11b   :  { %2605 = vmatmul.mubr.f32.gmra.mxu1 %v500_v4  ;;  %2693 = vmatprep.subr.mxu1 %v1199_v9 }
 0x11c   :  { %2694 = vmatpush3.msra.mxu1 %v1199_v9 }
 0x11d   :  { %2695 = vmatprep.subr.mxu1 %v1198_v10 }
 0x11e   :  { %2696 = vmatpush3.msra.mxu1 %v1198_v10 }
 0x11f   :  { %2697 = vmatprep.subr.mxu1 %v1197_v11 }
 0x120   :  { %2698 = vmatpush3.msra.mxu1 %v1197_v11 }
 0x121   :  { %2699 = vmatprep.subr.mxu1 %v1196_v12 }
 0x122   :  { %2700 = vmatpush3.msra.mxu1 %v1196_v12 }
 0x123   :  { %2701 = vmatprep.subr.mxu1 %v1195_v13 }
 0x124   :  { %2702 = vmatpush3.msra.mxu1 %v1195_v13 }
 0x125   :  { %2703 = vmatprep.subr.mxu1 %v1194_v14 }
 0x126   :  { %2704 = vmatpush3.msra.mxu1 %v1194_v14 }
 0x127   :  { %2705 = vmatprep.subr.mxu1 %v1193_v15 }
 0x128   :  { %2706 = vmatpush3.msra.mxu1 %v1193_v15 }
 0x129   :  { %2707 = vmatprep.subr.mxu1 %v1192_v16 }
 0x12a   :  { %2708 = vmatpush3.msra.mxu1 %v1192_v16 }
 0x12b   :  { %2709 = vmatprep.subr.mxu1 %v1191_v17 }
 0x12c   :  { %2710 = vmatpush3.msra.mxu1 %v1191_v17 }
 0x12d   :  { %2711 = vmatprep.subr.mxu1 %v1190_v18 }
 0x12e   :  { %2712 = vmatpush3.msra.mxu1 %v1190_v18 }
 0x12f   :  { %2713 = vmatprep.subr.mxu1 %v1189_v19 }
 0x130   :  { %2714 = vmatpush3.msra.mxu1 %v1189_v19 }
 0x19f   :  { %v2561_v21 = vpop.f32.mrf.mxu1 }
 0x1a0   :  { %v594_v22 = vadd.f32 %v2561_v21, %v3210_v20 }
 0x1a1   :  { %v588_v23 = vpop.f32.mrf.mxu1 }
 0x1a2   :  { %v589_v24 = vadd.f32 %v3210_v20, %v588_v23  ;;  %v780_v25 = vmul.f32 0.01, %v594_v22  ;;  %vm748_vm1 = vcmp.ge.f32.partialorder %v594_v22, 0.0 }
 0x1a3   :  { %v2564_v26 = vpop.f32.mrf.mxu1 }
 0x1a4   :  { %v779_v27 = vmul.f32 0.01, %v589_v24  ;;  %v604_v28 = vadd.f32 %v2564_v26, %v3210_v20  ;;  %vm747_vm2 = vcmp.ge.f32.partialorder %v589_v24, 0.0  ;;  %v812_v32 = vsel %vm748_vm1, %v594_v22, %v780_v25 }
 0x1a5   :  { %v598_v29 = vpop.f32.mrf.mxu1 }
 0x1a6   :  { %v599_v30 = vadd.f32 %v3210_v20, %v598_v29  ;;  %v811_v31 = vsel %vm747_vm2, %v589_v24, %v779_v27  ;;  %v782_v33 = vmul.f32 0.01, %v604_v28  ;;  %vm750_vm4 = vcmp.ge.f32.partialorder %v604_v28, 0.0 }
 0x1a7   :  { %v2567_v34 = vpop.f32.mrf.mxu1  ;;  %2639 = vmatprep.mubr.f32.mxu0 %v811_v31 }
 0x1a8   :  { %v781_v35 = vmul.f32 0.01, %v599_v30  ;;  %v614_v36 = vadd.f32 %v2567_v34, %v3210_v20  ;;  %2640 = vmatmul.mubr.f32.vlgmr.msra.gmra.mxu0 %v812_v32  ;;  %vm749_vm3 = vcmp.ge.f32.partialorder %v599_v30, 0.0  ;;  %v814_v42 = vsel %vm750_vm4, %v604_v28, %v782_v33 }
 0x1a9   :  { %v608_v37 = vpop.f32.mrf.mxu1 }
 0x1aa   :  { %v609_v38 = vadd.f32 %v3210_v20, %v608_v37  ;;  %v813_v39 = vsel %vm749_vm3, %v599_v30, %v781_v35  ;;  %v784_v40 = vmul.f32 0.01, %v614_v36  ;;  %vm752_vm6 = vcmp.ge.f32.partialorder %v614_v36, 0.0 }
 0x1ab   :  { %v2570_v41 = vpop.f32.mrf.mxu1  ;;  %2642 = vmatprep.mubr.f32.mxu0 %v813_v39 }
 0x1ac   :  { %v783_v43 = vmul.f32 0.01, %v609_v38  ;;  %v624_v44 = vadd.f32 %v2570_v41, %v3210_v20  ;;  %2643 = vmatmul.mubr.f32.gmra.mxu0 %v814_v42  ;;  %vm751_vm5 = vcmp.ge.f32.partialorder %v609_v38, 0.0  ;;  %v816_v50 = vsel %vm752_vm6, %v614_v36, %v784_v40 }
 0x1ad   :  { %v618_v45 = vpop.f32.mrf.mxu1 }
 0x1ae   :  { %v619_v46 = vadd.f32 %v3210_v20, %v618_v45  ;;  %v815_v47 = vsel %vm751_vm5, %v609_v38, %v783_v43  ;;  %v786_v48 = vmul.f32 0.01, %v624_v44  ;;  %vm754_vm8 = vcmp.ge.f32.partialorder %v624_v44, 0.0 }
 0x1af   :  { %v2573_v49 = vpop.f32.mrf.mxu1  ;;  %2645 = vmatprep.mubr.f32.mxu0 %v815_v47 }
 0x1b0   :  { %v785_v51 = vmul.f32 0.01, %v619_v46  ;;  %v634_v52 = vadd.f32 %v2573_v49, %v3210_v20  ;;  %2646 = vmatmul.mubr.f32.gmra.mxu0 %v816_v50  ;;  %vm753_vm7 = vcmp.ge.f32.partialorder %v619_v46, 0.0  ;;  %v818_v58 = vsel %vm754_vm8, %v624_v44, %v786_v48 }
 0x1b1   :  { %v628_v53 = vpop.f32.mrf.mxu1 }
 0x1b2   :  { %v629_v54 = vadd.f32 %v3210_v20, %v628_v53  ;;  %v817_v55 = vsel %vm753_vm7, %v619_v46, %v785_v51  ;;  %v788_v56 = vmul.f32 0.01, %v634_v52  ;;  %vm756_vm10 = vcmp.ge.f32.partialorder %v634_v52, 0.0 }
 0x1b3   :  { %v2576_v57 = vpop.f32.mrf.mxu1  ;;  %2648 = vmatprep.mubr.f32.mxu0 %v817_v55 }
 0x1b4   :  { %v787_v59 = vmul.f32 0.01, %v629_v54  ;;  %v644_v60 = vadd.f32 %v2576_v57, %v3210_v20  ;;  %2649 = vmatmul.mubr.f32.gmra.mxu0 %v818_v58  ;;  %vm755_vm9 = vcmp.ge.f32.partialorder %v629_v54, 0.0  ;;  %v820_v3 = vsel %vm756_vm10, %v634_v52, %v788_v56 }
 0x1b5   :  { %v638_v61 = vpop.f32.mrf.mxu1 }
 0x1b6   :  { %v639_v62 = vadd.f32 %v3210_v20, %v638_v61  ;;  %v819_v63 = vsel %vm755_vm9, %v629_v54, %v787_v59  ;;  %v790_v0 = vmul.f32 0.01, %v644_v60  ;;  %vm758_vm12 = vcmp.ge.f32.partialorder %v644_v60, 0.0 }
 0x1b7   :  { %v2579_v1 = vpop.f32.mrf.mxu1  ;;  %2651 = vmatprep.mubr.f32.mxu0 %v819_v63 }
 0x1b8   :  { %v789_v4 = vmul.f32 0.01, %v639_v62  ;;  %v654_v5 = vadd.f32 %v2579_v1, %v3210_v20  ;;  %2652 = vmatmul.mubr.f32.gmra.mxu0 %v820_v3  ;;  %vm757_vm11 = vcmp.ge.f32.partialorder %v639_v62, 0.0  ;;  %v822_v10 = vsel %vm758_vm12, %v644_v60, %v790_v0 }
 0x1b9   :  { %v648_v6 = vpop.f32.mrf.mxu1 }
 0x1ba   :  { %v649_v7 = vadd.f32 %v3210_v20, %v648_v6  ;;  %v821_v2 = vsel %vm757_vm11, %v639_v62, %v789_v4  ;;  %v792_v8 = vmul.f32 0.01, %v654_v5  ;;  %vm760_vm14 = vcmp.ge.f32.partialorder %v654_v5, 0.0 }
 0x1bb   :  { %v2582_v9 = vpop.f32.mrf.mxu1  ;;  %2654 = vmatprep.mubr.f32.mxu0 %v821_v2 }
 0x1bc   :  { %v791_v11 = vmul.f32 0.01, %v649_v7  ;;  %v664_v12 = vadd.f32 %v2582_v9, %v3210_v20  ;;  %2655 = vmatmul.mubr.f32.gmra.mxu0 %v822_v10  ;;  %vm759_vm13 = vcmp.ge.f32.partialorder %v649_v7, 0.0  ;;  %v824_v18 = vsel %vm760_vm14, %v654_v5, %v792_v8 }
 0x1bd   :  { %v658_v13 = vpop.f32.mrf.mxu1 }
 0x1be   :  { %v659_v14 = vadd.f32 %v3210_v20, %v658_v13  ;;  %v823_v15 = vsel %vm759_vm13, %v649_v7, %v791_v11  ;;  %v794_v16 = vmul.f32 0.01, %v664_v12  ;;  %vm762_vm0 = vcmp.ge.f32.partialorder %v664_v12, 0.0 }
 0x1bf   :  { %v2585_v17 = vpop.f32.mrf.mxu1  ;;  %2657 = vmatprep.mubr.f32.mxu0 %v823_v15 }
 0x1c0   :  { %v793_v19 = vmul.f32 0.01, %v659_v14  ;;  %v674_v21 = vadd.f32 %v2585_v17, %v3210_v20  ;;  %2658 = vmatmul.mubr.f32.gmra.mxu0 %v824_v18  ;;  %vm761_vm15 = vcmp.ge.f32.partialorder %v659_v14, 0.0  ;;  %v826_v27 = vsel %vm762_vm0, %v664_v12, %v794_v16 }
 0x1c1   :  { %v668_v22 = vpop.f32.mrf.mxu1 }
 0x1c2   :  { %v669_v23 = vadd.f32 %v3210_v20, %v668_v22  ;;  %v825_v24 = vsel %vm761_vm15, %v659_v14, %v793_v19  ;;  %v796_v25 = vmul.f32 0.01, %v674_v21  ;;  %vm764_vm2 = vcmp.ge.f32.partialorder %v674_v21, 0.0 }
 0x1c3   :  { %v2588_v26 = vpop.f32.mrf.mxu1  ;;  %2660 = vmatprep.mubr.f32.mxu0 %v825_v24  ;;  %v1187_v24 = vld [vmem:[#allocation2 + $0x100] sm:$0xff] }
 0x1c4   :  { %v795_v28 = vmul.f32 0.01, %v669_v23  ;;  %v684_v29 = vadd.f32 %v2588_v26, %v3210_v20  ;;  %2661 = vmatmul.mubr.f32.gmra.mxu0 %v826_v27  ;;  %vm763_vm1 = vcmp.ge.f32.partialorder %v669_v23, 0.0  ;;  %v828_v35 = vsel %vm764_vm2, %v674_v21, %v796_v25  ;;  %v1545_v25 = vld [vmem:[#allocation2 + $0x1f8] sm:$0xff]  ;;  %v1543_v26 = vld [vmem:[#allocation2 + $0x1e8] sm:$0xff]  ;;  %v1542_v27 = vld [vmem:[#allocation2 + $0x1e0] sm:$0xff] }
 0x1c5   :  { %v678_v30 = vpop.f32.mrf.mxu1  ;;  %2767 = vmatprep.subr.mxu0 %v1545_v25 }
 0x1c6   :  { %v679_v31 = vadd.f32 %v3210_v20, %v678_v30  ;;  %v827_v32 = vsel %vm763_vm1, %v669_v23, %v795_v28  ;;  %v798_v33 = vmul.f32 0.01, %v684_v29  ;;  %vm766_vm4 = vcmp.ge.f32.partialorder %v684_v29, 0.0  ;;  %v1188_v23 = vld [vmem:[#allocation2 + $0x108] sm:$0xff]  ;;  %2768 = vmatpush3.msra.mxu0 %v1545_v25  ;;  %v1541_v28 = vld [vmem:[#allocation2 + $0x1d8] sm:$0xff] }
 0x1c7   :  { %v2591_v34 = vpop.f32.mrf.mxu1  ;;  %2663 = vmatprep.mubr.f32.mxu0 %v827_v32  ;;  %2715 = vmatprep.subr.mxu1 %v1188_v23  ;;  %v1539_v30 = vld [vmem:[#allocation2 + $0x1c8] sm:$0xff]  ;;  %v1537_v32 = vld [vmem:[#allocation2 + $0x1b8] sm:$0xff] }
 0x1c8   :  { %v797_v36 = vmul.f32 0.01, %v679_v31  ;;  %v694_v37 = vadd.f32 %v2591_v34, %v3210_v20  ;;  %2664 = vmatmul.mubr.f32.gmra.mxu0 %v828_v35  ;;  %vm765_vm3 = vcmp.ge.f32.partialorder %v679_v31, 0.0  ;;  %v830_v43 = vsel %vm766_vm4, %v684_v29, %v798_v33  ;;  %2716 = vmatpush3.msra.mxu1 %v1188_v23  ;;  %v1540_v29 = vld [vmem:[#allocation2 + $0x1d0] sm:$0xff]  ;;  %v1535_v34 = vld [vmem:[#allocation2 + $0x1a8] sm:$0xff]  ;;  %v1534_v35 = vld [vmem:[#allocation2 + $0x1a0] sm:$0xff] }
 0x1c9   :  { %v688_v38 = vpop.f32.mrf.mxu1  ;;  %2717 = vmatprep.subr.mxu1 %v1187_v24  ;;  %v1536_v33 = vld [vmem:[#allocation2 + $0x1b0] sm:$0xff] }
 0x1ca   :  { %v689_v39 = vadd.f32 %v3210_v20, %v688_v38  ;;  %v829_v40 = vsel %vm765_vm3, %v679_v31, %v797_v36  ;;  %v800_v41 = vmul.f32 0.01, %v694_v37  ;;  %vm768_vm6 = vcmp.ge.f32.partialorder %v694_v37, 0.0  ;;  %2718 = vmatpush3.msra.mxu1 %v1187_v24  ;;  %v1538_v31 = vld [vmem:[#allocation2 + $0x1c0] sm:$0xff]  ;;  %v1533_v36 = vld [vmem:[#allocation2 + $0x198] sm:$0xff] }
 0x1cb   :  { %v2594_v42 = vpop.f32.mrf.mxu1  ;;  %2666 = vmatprep.mubr.f32.mxu0 %v829_v40  ;;  %v3247_v38 = vld [vmem:[%s3606_s4 + $0x1] ss:$0 sm:$0xff] }
 0x1cc   :  { %v799_v44 = vmul.f32 0.01, %v689_v39  ;;  %v704_v45 = vadd.f32 %v2594_v42, %v3210_v20  ;;  %2667 = vmatmul.mubr.f32.gmra.mxu0 %v830_v43  ;;  %vm767_vm5 = vcmp.ge.f32.partialorder %v689_v39, 0.0  ;;  %v832_v51 = vsel %vm768_vm6, %v694_v37, %v800_v41  ;;  %v1532_v37 = vld [vmem:[#allocation2 + $0x190] sm:$0xff] }
 0x1cd   :  { %v698_v46 = vpop.f32.mrf.mxu1 }
 0x1ce   :  { %v699_v47 = vadd.f32 %v3210_v20, %v698_v46  ;;  %v831_v48 = vsel %vm767_vm5, %v689_v39, %v799_v44  ;;  %v802_v49 = vmul.f32 0.01, %v704_v45  ;;  %vm770_vm8 = vcmp.ge.f32.partialorder %v704_v45, 0.0 }
 0x1cf   :  { %v2597_v50 = vpop.f32.mrf.mxu1  ;;  %2669 = vmatprep.mubr.f32.mxu0 %v831_v48 }
 0x1d0   :  { %v801_v52 = vmul.f32 0.01, %v699_v47  ;;  %v714_v53 = vadd.f32 %v2597_v50, %v3210_v20  ;;  %2670 = vmatmul.mubr.f32.gmra.mxu0 %v832_v51  ;;  %vm769_vm7 = vcmp.ge.f32.partialorder %v699_v47, 0.0  ;;  %v834_v59 = vsel %vm770_vm8, %v704_v45, %v802_v49 }
 0x1d1   :  { %v708_v54 = vpop.f32.mrf.mxu1 }
 0x1d2   :  { %v709_v55 = vadd.f32 %v3210_v20, %v708_v54  ;;  %v833_v56 = vsel %vm769_vm7, %v699_v47, %v801_v52  ;;  %v804_v57 = vmul.f32 0.01, %v714_v53  ;;  %vm772_vm10 = vcmp.ge.f32.partialorder %v714_v53, 0.0 }
 0x1d3   :  { %v2600_v58 = vpop.f32.mrf.mxu1  ;;  %2672 = vmatprep.mubr.f32.mxu0 %v833_v56 }
 0x1d4   :  { %v803_v60 = vmul.f32 0.01, %v709_v55  ;;  %v724_v61 = vadd.f32 %v2600_v58, %v3210_v20  ;;  %2673 = vmatmul.mubr.f32.gmra.mxu0 %v834_v59  ;;  %vm771_vm9 = vcmp.ge.f32.partialorder %v709_v55, 0.0  ;;  %v836_v4 = vsel %vm772_vm10, %v714_v53, %v804_v57 }
 0x1d5   :  { %v718_v62 = vpop.f32.mrf.mxu1 }
 0x1d6   :  { %v719_v63 = vadd.f32 %v3210_v20, %v718_v62  ;;  %v835_v0 = vsel %vm771_vm9, %v709_v55, %v803_v60  ;;  %v806_v1 = vmul.f32 0.01, %v724_v61  ;;  %vm774_vm12 = vcmp.ge.f32.partialorder %v724_v61, 0.0 }
 0x1d7   :  { %v2603_v3 = vpop.f32.mrf.mxu1  ;;  %2675 = vmatprep.mubr.f32.mxu0 %v835_v0 }
 0x1d8   :  { %v805_v5 = vmul.f32 0.01, %v719_v63  ;;  %v734_v6 = vadd.f32 %v2603_v3, %v3210_v20  ;;  %2676 = vmatmul.mubr.f32.gmra.mxu0 %v836_v4  ;;  %vm773_vm11 = vcmp.ge.f32.partialorder %v719_v63, 0.0  ;;  %v838_v11 = vsel %vm774_vm12, %v724_v61, %v806_v1 }
 0x1d9   :  { %v728_v7 = vpop.f32.mrf.mxu1 }
 0x1da   :  { %v729_v2 = vadd.f32 %v3210_v20, %v728_v7  ;;  %v837_v8 = vsel %vm773_vm11, %v719_v63, %v805_v5  ;;  %v808_v9 = vmul.f32 0.01, %v734_v6  ;;  %vm776_vm14 = vcmp.ge.f32.partialorder %v734_v6, 0.0 }
 0x1db   :  { %v2606_v10 = vpop.f32.mrf.mxu1  ;;  %2678 = vmatprep.mubr.f32.mxu0 %v837_v8 }
 0x1dc   :  { %v807_v12 = vmul.f32 0.01, %v729_v2  ;;  %v744_v13 = vadd.f32 %v2606_v10, %v3210_v20  ;;  %2679 = vmatmul.mubr.f32.gmra.mxu0 %v838_v11  ;;  %vm775_vm13 = vcmp.ge.f32.partialorder %v729_v2, 0.0  ;;  %v840_v18 = vsel %vm776_vm14, %v734_v6, %v808_v9 }
 0x1dd   :  { %v738_v14 = vpop.f32.mrf.mxu1 }
 0x1de   :  { %v739_v15 = vadd.f32 %v3210_v20, %v738_v14  ;;  %v839_v16 = vsel %vm775_vm13, %v729_v2, %v807_v12  ;;  %v810_v17 = vmul.f32 0.01, %v744_v13  ;;  %vm778_vm0 = vcmp.ge.f32.partialorder %v744_v13, 0.0  ;;  %v1544_v20 = vld [vmem:[#allocation2 + $0x1f0] sm:$0xff] }
 0x1df   :  { %2681 = vmatprep.mubr.f32.mxu0 %v839_v16  ;;  %2769 = vmatprep.subr.mxu0 %v1544_v20 }
 0x1e0   :  { %v809_v19 = vmul.f32 0.01, %v739_v15  ;;  %2682 = vmatmul.mubr.f32.gmra.mxu0 %v840_v18  ;;  %vm777_vm15 = vcmp.ge.f32.partialorder %v739_v15, 0.0  ;;  %v842_v22 = vsel %vm778_vm0, %v744_v13, %v810_v17 }
 0x1e1   :  { %2770 = vmatpush3.msra.mxu0 %v1544_v20 }
 0x1e2   :  { %v841_v21 = vsel %vm777_vm15, %v739_v15, %v809_v19  ;;  %2771 = vmatprep.subr.mxu0 %v1543_v26 }
 0x1e3   :  { %2684 = vmatprep.mubr.f32.mxu0 %v841_v21  ;;  %2772 = vmatpush3.msra.mxu0 %v1543_v26 }
 0x1e4   :  { %2685 = vmatmul.mubr.f32.gmra.mxu0 %v842_v22  ;;  %2773 = vmatprep.subr.mxu0 %v1542_v27 }
 0x1e5   :  { %2774 = vmatpush3.msra.mxu0 %v1542_v27 }
 0x1e6   :  { %2775 = vmatprep.subr.mxu0 %v1541_v28 }
 0x1e7   :  { %2776 = vmatpush3.msra.mxu0 %v1541_v28 }
 0x1e8   :  { %2777 = vmatprep.subr.mxu0 %v1540_v29 }
 0x1e9   :  { %2778 = vmatpush3.msra.mxu0 %v1540_v29 }
 0x1ea   :  { %2779 = vmatprep.subr.mxu0 %v1539_v30 }
 0x1eb   :  { %2780 = vmatpush3.msra.mxu0 %v1539_v30 }
 0x1ec   :  { %2781 = vmatprep.subr.mxu0 %v1538_v31 }
 0x1ed   :  { %2782 = vmatpush3.msra.mxu0 %v1538_v31 }
 0x1ee   :  { %2783 = vmatprep.subr.mxu0 %v1537_v32 }
 0x1ef   :  { %2784 = vmatpush3.msra.mxu0 %v1537_v32 }
 0x1f0   :  { %2785 = vmatprep.subr.mxu0 %v1536_v33 }
 0x1f1   :  { %2786 = vmatpush3.msra.mxu0 %v1536_v33 }
 0x1f2   :  { %2787 = vmatprep.subr.mxu0 %v1535_v34 }
 0x1f3   :  { %2788 = vmatpush3.msra.mxu0 %v1535_v34 }
 0x1f4   :  { %2789 = vmatprep.subr.mxu0 %v1534_v35 }
 0x1f5   :  { %2790 = vmatpush3.msra.mxu0 %v1534_v35 }
 0x1f6   :  { %2791 = vmatprep.subr.mxu0 %v1533_v36 }
 0x1f7   :  { %2792 = vmatpush3.msra.mxu0 %v1533_v36 }
 0x1f8   :  { %2793 = vmatprep.subr.mxu0 %v1532_v37 }
 0x1f9   :  { %2794 = vmatpush3.msra.mxu0 %v1532_v37 }
 0x268   :  { %v2641_v39 = vpop.f32.mrf.mxu0 }
 0x269   :  { %v937_v40 = vadd.f32 %v2641_v39, %v3247_v38 }
 0x26a   :  { %v931_v41 = vpop.f32.mrf.mxu0 }
 0x26b   :  { %v932_v42 = vadd.f32 %v3247_v38, %v931_v41  ;;  %v1123_v43 = vmul.f32 0.01, %v937_v40  ;;  %vm1091_vm1 = vcmp.ge.f32.partialorder %v937_v40, 0.0 }
 0x26c   :  { %v2644_v44 = vpop.f32.mrf.mxu0 }
 0x26d   :  { %v1122_v45 = vmul.f32 0.01, %v932_v42  ;;  %v947_v46 = vadd.f32 %v2644_v44, %v3247_v38  ;;  %vm1090_vm2 = vcmp.ge.f32.partialorder %v932_v42, 0.0  ;;  %v1155_v50 = vsel %vm1091_vm1, %v937_v40, %v1123_v43 }
 0x26e   :  { %v941_v47 = vpop.f32.mrf.mxu0 }
 0x26f   :  { %v942_v48 = vadd.f32 %v3247_v38, %v941_v47  ;;  %v1154_v49 = vsel %vm1090_vm2, %v932_v42, %v1122_v45  ;;  %v1125_v51 = vmul.f32 0.01, %v947_v46  ;;  %vm1093_vm4 = vcmp.ge.f32.partialorder %v947_v46, 0.0 }
 0x270   :  { %v2647_v52 = vpop.f32.mrf.mxu0  ;;  %2719 = vmatprep.mubr.f32.mxu1 %v1154_v49 }
 0x271   :  { %v1124_v53 = vmul.f32 0.01, %v942_v48  ;;  %v957_v54 = vadd.f32 %v2647_v52, %v3247_v38  ;;  %2720 = vmatmul.mubr.f32.vlgmr.msra.gmra.mxu1 %v1155_v50  ;;  %vm1092_vm3 = vcmp.ge.f32.partialorder %v942_v48, 0.0  ;;  %v1157_v60 = vsel %vm1093_vm4, %v947_v46, %v1125_v51 }
 0x272   :  { %v951_v55 = vpop.f32.mrf.mxu0 }
 0x273   :  { %v952_v56 = vadd.f32 %v3247_v38, %v951_v55  ;;  %v1156_v57 = vsel %vm1092_vm3, %v942_v48, %v1124_v53  ;;  %v1127_v58 = vmul.f32 0.01, %v957_v54  ;;  %vm1095_vm6 = vcmp.ge.f32.partialorder %v957_v54, 0.0 }
 0x274   :  { %v2650_v59 = vpop.f32.mrf.mxu0  ;;  %2722 = vmatprep.mubr.f32.mxu1 %v1156_v57 }
 0x275   :  { %v1126_v61 = vmul.f32 0.01, %v952_v56  ;;  %v967_v62 = vadd.f32 %v2650_v59, %v3247_v38  ;;  %2723 = vmatmul.mubr.f32.gmra.mxu1 %v1157_v60  ;;  %vm1094_vm5 = vcmp.ge.f32.partialorder %v952_v56, 0.0  ;;  %v1159_v5 = vsel %vm1095_vm6, %v957_v54, %v1127_v58 }
 0x276   :  { %v961_v63 = vpop.f32.mrf.mxu0 }
 0x277   :  { %v962_v0 = vadd.f32 %v3247_v38, %v961_v63  ;;  %v1158_v1 = vsel %vm1094_vm5, %v952_v56, %v1126_v61  ;;  %v1129_v3 = vmul.f32 0.01, %v967_v62  ;;  %vm1097_vm8 = vcmp.ge.f32.partialorder %v967_v62, 0.0 }
 0x278   :  { %v2653_v4 = vpop.f32.mrf.mxu0  ;;  %2725 = vmatprep.mubr.f32.mxu1 %v1158_v1 }
 0x279   :  { %v1128_v6 = vmul.f32 0.01, %v962_v0  ;;  %v977_v7 = vadd.f32 %v2653_v4, %v3247_v38  ;;  %2726 = vmatmul.mubr.f32.gmra.mxu1 %v1159_v5  ;;  %vm1096_vm7 = vcmp.ge.f32.partialorder %v962_v0, 0.0  ;;  %v1161_v12 = vsel %vm1097_vm8, %v967_v62, %v1129_v3 }
 0x27a   :  { %v971_v2 = vpop.f32.mrf.mxu0 }
 0x27b   :  { %v972_v8 = vadd.f32 %v3247_v38, %v971_v2  ;;  %v1160_v9 = vsel %vm1096_vm7, %v962_v0, %v1128_v6  ;;  %v1131_v10 = vmul.f32 0.01, %v977_v7  ;;  %vm1099_vm10 = vcmp.ge.f32.partialorder %v977_v7, 0.0 }
 0x27c   :  { %v2656_v11 = vpop.f32.mrf.mxu0  ;;  %2728 = vmatprep.mubr.f32.mxu1 %v1160_v9 }
 0x27d   :  { %v1130_v13 = vmul.f32 0.01, %v972_v8  ;;  %v987_v14 = vadd.f32 %v2656_v11, %v3247_v38  ;;  %2729 = vmatmul.mubr.f32.gmra.mxu1 %v1161_v12  ;;  %vm1098_vm9 = vcmp.ge.f32.partialorder %v972_v8, 0.0  ;;  %v1163_v21 = vsel %vm1099_vm10, %v977_v7, %v1131_v10 }
 0x27e   :  { %v981_v15 = vpop.f32.mrf.mxu0 }
 0x27f   :  { %v982_v16 = vadd.f32 %v3247_v38, %v981_v15  ;;  %v1162_v17 = vsel %vm1098_vm9, %v972_v8, %v1130_v13  ;;  %v1133_v18 = vmul.f32 0.01, %v987_v14  ;;  %vm1101_vm12 = vcmp.ge.f32.partialorder %v987_v14, 0.0 }
 0x280   :  { %v2659_v19 = vpop.f32.mrf.mxu0  ;;  %2731 = vmatprep.mubr.f32.mxu1 %v1162_v17 }
 0x281   :  { %v1132_v22 = vmul.f32 0.01, %v982_v16  ;;  %v997_v23 = vadd.f32 %v2659_v19, %v3247_v38  ;;  %2732 = vmatmul.mubr.f32.gmra.mxu1 %v1163_v21  ;;  %vm1100_vm11 = vcmp.ge.f32.partialorder %v982_v16, 0.0  ;;  %v1165_v28 = vsel %vm1101_vm12, %v987_v14, %v1133_v18 }
 0x282   :  { %v991_v24 = vpop.f32.mrf.mxu0 }
 0x283   :  { %v992_v25 = vadd.f32 %v3247_v38, %v991_v24  ;;  %v1164_v20 = vsel %vm1100_vm11, %v982_v16, %v1132_v22  ;;  %v1135_v26 = vmul.f32 0.01, %v997_v23  ;;  %vm1103_vm14 = vcmp.ge.f32.partialorder %v997_v23, 0.0 }
 0x284   :  { %v2662_v27 = vpop.f32.mrf.mxu0  ;;  %2734 = vmatprep.mubr.f32.mxu1 %v1164_v20 }
 0x285   :  { %v1134_v29 = vmul.f32 0.01, %v992_v25  ;;  %v1007_v30 = vadd.f32 %v2662_v27, %v3247_v38  ;;  %2735 = vmatmul.mubr.f32.gmra.mxu1 %v1165_v28  ;;  %vm1102_vm13 = vcmp.ge.f32.partialorder %v992_v25, 0.0  ;;  %v1167_v36 = vsel %vm1103_vm14, %v997_v23, %v1135_v26 }
 0x286   :  { %v1001_v31 = vpop.f32.mrf.mxu0 }
 0x287   :  { %v1002_v32 = vadd.f32 %v3247_v38, %v1001_v31  ;;  %v1166_v33 = vsel %vm1102_vm13, %v992_v25, %v1134_v29  ;;  %v1137_v34 = vmul.f32 0.01, %v1007_v30  ;;  %vm1105_vm0 = vcmp.ge.f32.partialorder %v1007_v30, 0.0 }
 0x288   :  { %v2665_v35 = vpop.f32.mrf.mxu0  ;;  %2737 = vmatprep.mubr.f32.mxu1 %v1166_v33 }
 0x289   :  { %v1136_v37 = vmul.f32 0.01, %v1002_v32  ;;  %v1017_v39 = vadd.f32 %v2665_v35, %v3247_v38  ;;  %2738 = vmatmul.mubr.f32.gmra.mxu1 %v1167_v36  ;;  %vm1104_vm15 = vcmp.ge.f32.partialorder %v1002_v32, 0.0  ;;  %v1169_v45 = vsel %vm1105_vm0, %v1007_v30, %v1137_v34 }
 0x28a   :  { %v1011_v40 = vpop.f32.mrf.mxu0 }
 0x28b   :  { %v1012_v41 = vadd.f32 %v3247_v38, %v1011_v40  ;;  %v1168_v42 = vsel %vm1104_vm15, %v1002_v32, %v1136_v37  ;;  %v1139_v43 = vmul.f32 0.01, %v1017_v39  ;;  %vm1107_vm2 = vcmp.ge.f32.partialorder %v1017_v39, 0.0 }
 0x28c   :  { %v2668_v44 = vpop.f32.mrf.mxu0  ;;  %2740 = vmatprep.mubr.f32.mxu1 %v1168_v42  ;;  %v1530_v42 = vld [vmem:[#allocation2 + $0x180] sm:$0xff] }
 0x28d   :  { %v1138_v46 = vmul.f32 0.01, %v1012_v41  ;;  %v1027_v47 = vadd.f32 %v2668_v44, %v3247_v38  ;;  %2741 = vmatmul.mubr.f32.gmra.mxu1 %v1169_v45  ;;  %vm1106_vm1 = vcmp.ge.f32.partialorder %v1012_v41, 0.0  ;;  %v1171_v53 = vsel %vm1107_vm2, %v1017_v39, %v1139_v43  ;;  %v3287_v43 = vld [vmem:[%s3607_s5 + $0x70] sm:$0xff]  ;;  %v3294_v44 = vld [vmem:[%s3607_s5 + $0x68] sm:$0xff]  ;;  %v3301_v45 = vld [vmem:[%s3607_s5 + $0x60] sm:$0xff] }
 0x28e   :  { %v1021_v48 = vpop.f32.mrf.mxu0 }
 0x28f   :  { %v1022_v49 = vadd.f32 %v3247_v38, %v1021_v48  ;;  %v1170_v50 = vsel %vm1106_vm1, %v1012_v41, %v1138_v46  ;;  %v1141_v51 = vmul.f32 0.01, %v1027_v47  ;;  %vm1109_vm4 = vcmp.ge.f32.partialorder %v1027_v47, 0.0  ;;  %v1531_v41 = vld [vmem:[#allocation2 + $0x188] sm:$0xff]  ;;  %v3308_v46 = vld [vmem:[%s3607_s5 + $0x58] sm:$0xff] }
 0x290   :  { %v2671_v52 = vpop.f32.mrf.mxu0  ;;  %2743 = vmatprep.mubr.f32.mxu1 %v1170_v50  ;;  %2795 = vmatprep.subr.mxu0 %v1531_v41  ;;  %v3322_v48 = vld [vmem:[%s3607_s5 + $0x48] sm:$0xff]  ;;  %v3336_v50 = vld [vmem:[%s3607_s5 + $0x38] sm:$0xff] }
 0x291   :  { %v1140_v54 = vmul.f32 0.01, %v1022_v49  ;;  %v1037_v55 = vadd.f32 %v2671_v52, %v3247_v38  ;;  %2744 = vmatmul.mubr.f32.gmra.mxu1 %v1171_v53  ;;  %vm1108_vm3 = vcmp.ge.f32.partialorder %v1022_v49, 0.0  ;;  %v1173_v61 = vsel %vm1109_vm4, %v1027_v47, %v1141_v51  ;;  %2796 = vmatpush3.msra.mxu0 %v1531_v41  ;;  %v3315_v47 = vld [vmem:[%s3607_s5 + $0x50] sm:$0xff]  ;;  %v3350_v52 = vld [vmem:[%s3607_s5 + $0x28] sm:$0xff]  ;;  %v3357_v53 = vld [vmem:[%s3607_s5 + $0x20] sm:$0xff] }
 0x292   :  { %v1031_v56 = vpop.f32.mrf.mxu0  ;;  %2797 = vmatprep.subr.mxu0 %v1530_v42  ;;  %v3343_v51 = vld [vmem:[%s3607_s5 + $0x30] sm:$0xff] }
 0x293   :  { %v1032_v57 = vadd.f32 %v3247_v38, %v1031_v56  ;;  %v1172_v58 = vsel %vm1108_vm3, %v1022_v49, %v1140_v54  ;;  %v1143_v59 = vmul.f32 0.01, %v1037_v55  ;;  %vm1111_vm6 = vcmp.ge.f32.partialorder %v1037_v55, 0.0  ;;  %2798 = vmatpush3.msra.mxu0 %v1530_v42  ;;  %v3329_v49 = vld [vmem:[%s3607_s5 + $0x40] sm:$0xff] }
 0x294   :  { %v2674_v60 = vpop.f32.mrf.mxu0  ;;  %2746 = vmatprep.mubr.f32.mxu1 %v1172_v58  ;;  %v3364_v54 = vld [vmem:[%s3606_s4 + $0x2] ss:$0 sm:$0xff] }
 0x295   :  { %v1142_v62 = vmul.f32 0.01, %v1032_v57  ;;  %v1047_v63 = vadd.f32 %v2674_v60, %v3247_v38  ;;  %2747 = vmatmul.mubr.f32.gmra.mxu1 %v1173_v61  ;;  %vm1110_vm5 = vcmp.ge.f32.partialorder %v1032_v57, 0.0  ;;  %v1175_v6 = vsel %vm1111_vm6, %v1037_v55, %v1143_v59 }
 0x296   :  { %v1041_v0 = vpop.f32.mrf.mxu0 }
 0x297   :  { %v1042_v1 = vadd.f32 %v3247_v38, %v1041_v0  ;;  %v1174_v3 = vsel %vm1110_vm5, %v1032_v57, %v1142_v62  ;;  %v1145_v4 = vmul.f32 0.01, %v1047_v63  ;;  %vm1113_vm8 = vcmp.ge.f32.partialorder %v1047_v63, 0.0 }
 0x298   :  { %v2677_v5 = vpop.f32.mrf.mxu0  ;;  %2749 = vmatprep.mubr.f32.mxu1 %v1174_v3 }
 0x299   :  { %v1144_v7 = vmul.f32 0.01, %v1042_v1  ;;  %v1057_v2 = vadd.f32 %v2677_v5, %v3247_v38  ;;  %2750 = vmatmul.mubr.f32.gmra.mxu1 %v1175_v6  ;;  %vm1112_vm7 = vcmp.ge.f32.partialorder %v1042_v1, 0.0  ;;  %v1177_v13 = vsel %vm1113_vm8, %v1047_v63, %v1145_v4 }
 0x29a   :  { %v1051_v8 = vpop.f32.mrf.mxu0 }
 0x29b   :  { %v1052_v9 = vadd.f32 %v3247_v38, %v1051_v8  ;;  %v1176_v10 = vsel %vm1112_vm7, %v1042_v1, %v1144_v7  ;;  %v1147_v11 = vmul.f32 0.01, %v1057_v2  ;;  %vm1115_vm10 = vcmp.ge.f32.partialorder %v1057_v2, 0.0 }
 0x29c   :  { %v2680_v12 = vpop.f32.mrf.mxu0  ;;  %2752 = vmatprep.mubr.f32.mxu1 %v1176_v10 }
 0x29d   :  { %v1146_v14 = vmul.f32 0.01, %v1052_v9  ;;  %v1067_v15 = vadd.f32 %v2680_v12, %v3247_v38  ;;  %2753 = vmatmul.mubr.f32.gmra.mxu1 %v1177_v13  ;;  %vm1114_vm9 = vcmp.ge.f32.partialorder %v1052_v9, 0.0  ;;  %v1179_v22 = vsel %vm1115_vm10, %v1057_v2, %v1147_v11 }
 0x29e   :  { %v1061_v16 = vpop.f32.mrf.mxu0 }
 0x29f   :  { %v1062_v17 = vadd.f32 %v3247_v38, %v1061_v16  ;;  %v1178_v18 = vsel %vm1114_vm9, %v1052_v9, %v1146_v14  ;;  %v1149_v19 = vmul.f32 0.01, %v1067_v15  ;;  %vm1117_vm12 = vcmp.ge.f32.partialorder %v1067_v15, 0.0 }
 0x2a0   :  { %v2683_v21 = vpop.f32.mrf.mxu0  ;;  %2755 = vmatprep.mubr.f32.mxu1 %v1178_v18 }
 0x2a1   :  { %v1148_v23 = vmul.f32 0.01, %v1062_v17  ;;  %v1077_v24 = vadd.f32 %v2683_v21, %v3247_v38  ;;  %2756 = vmatmul.mubr.f32.gmra.mxu1 %v1179_v22  ;;  %vm1116_vm11 = vcmp.ge.f32.partialorder %v1062_v17, 0.0  ;;  %v1181_v29 = vsel %vm1117_vm12, %v1067_v15, %v1149_v19 }
 0x2a2   :  { %v1071_v25 = vpop.f32.mrf.mxu0 }
 0x2a3   :  { %v1072_v20 = vadd.f32 %v3247_v38, %v1071_v25  ;;  %v1180_v26 = vsel %vm1116_vm11, %v1062_v17, %v1148_v23  ;;  %v1151_v27 = vmul.f32 0.01, %v1077_v24  ;;  %vm1119_vm14 = vcmp.ge.f32.partialorder %v1077_v24, 0.0 }
 0x2a4   :  { %v2686_v28 = vpop.f32.mrf.mxu0  ;;  %2758 = vmatprep.mubr.f32.mxu1 %v1180_v26 }
 0x2a5   :  { %v1150_v30 = vmul.f32 0.01, %v1072_v20  ;;  %v1087_v31 = vadd.f32 %v2686_v28, %v3247_v38  ;;  %2759 = vmatmul.mubr.f32.gmra.mxu1 %v1181_v29  ;;  %vm1118_vm13 = vcmp.ge.f32.partialorder %v1072_v20, 0.0  ;;  %v1183_v36 = vsel %vm1119_vm14, %v1077_v24, %v1151_v27 }
 0x2a6   :  { %v1081_v32 = vpop.f32.mrf.mxu0 }
 0x2a7   :  { %v1082_v33 = vadd.f32 %v3247_v38, %v1081_v32  ;;  %v1182_v34 = vsel %vm1118_vm13, %v1072_v20, %v1150_v30  ;;  %v1153_v35 = vmul.f32 0.01, %v1087_v31  ;;  %vm1121_vm0 = vcmp.ge.f32.partialorder %v1087_v31, 0.0  ;;  %v1887_v38 = vld [vmem:[%s3607_s5 + $0x78] sm:$0xff] }
 0x2a8   :  { %2761 = vmatprep.mubr.f32.mxu1 %v1182_v34  ;;  %2927 = vmatprep.subr.mxu1 %v1887_v38 }
 0x2a9   :  { %v1152_v37 = vmul.f32 0.01, %v1082_v33  ;;  %2762 = vmatmul.mubr.f32.gmra.mxu1 %v1183_v36  ;;  %vm1120_vm15 = vcmp.ge.f32.partialorder %v1082_v33, 0.0  ;;  %v1185_v40 = vsel %vm1121_vm0, %v1087_v31, %v1153_v35  ;;  %2847 = vmatprep.subr.mxu0 %v1887_v38 }
 0x2aa   :  { %2943 = vmatpush3.msra.mxu1 %v1887_v38 }
 0x2ab   :  { %v1184_v39 = vsel %vm1120_vm15, %v1082_v33, %v1152_v37  ;;  %2928 = vmatprep.subr.mxu1 %v3287_v43 }
 0x2ac   :  { %2764 = vmatprep.mubr.f32.mxu1 %v1184_v39  ;;  %2944 = vmatpush3.msra.mxu1 %v3287_v43 }
 0x2ad   :  { %2765 = vmatmul.mubr.f32.gmra.mxu1 %v1185_v40  ;;  %2929 = vmatprep.subr.mxu1 %v3294_v44 }
 0x2ae   :  { %2945 = vmatpush3.msra.mxu1 %v3294_v44 }
 0x2af   :  { %2930 = vmatprep.subr.mxu1 %v3301_v45 }
 0x2b0   :  { %2946 = vmatpush3.msra.mxu1 %v3301_v45 }
 0x2b1   :  { %2931 = vmatprep.subr.mxu1 %v3308_v46 }
 0x2b2   :  { %2947 = vmatpush3.msra.mxu1 %v3308_v46 }
 0x2b3   :  { %2932 = vmatprep.subr.mxu1 %v3315_v47 }
 0x2b4   :  { %2948 = vmatpush3.msra.mxu1 %v3315_v47 }
 0x2b5   :  { %2933 = vmatprep.subr.mxu1 %v3322_v48 }
 0x2b6   :  { %2949 = vmatpush3.msra.mxu1 %v3322_v48 }
 0x2b7   :  { %2934 = vmatprep.subr.mxu1 %v3329_v49 }
 0x2b8   :  { %2950 = vmatpush3.msra.mxu1 %v3329_v49 }
 0x2b9   :  { %2935 = vmatprep.subr.mxu1 %v3336_v50 }
 0x2ba   :  { %2951 = vmatpush3.msra.mxu1 %v3336_v50 }
 0x2bb   :  { %2936 = vmatprep.subr.mxu1 %v3343_v51 }
 0x2bc   :  { %2952 = vmatpush3.msra.mxu1 %v3343_v51 }
 0x2bd   :  { %2937 = vmatprep.subr.mxu1 %v3350_v52 }
 0x2be   :  { %2953 = vmatpush3.msra.mxu1 %v3350_v52 }
 0x2bf   :  { %2938 = vmatprep.subr.mxu1 %v3357_v53 }
 0x2c0   :  { %2954 = vmatpush3.msra.mxu1 %v3357_v53 }
 0x331   :  { %v2721_v55 = vpop.f32.mrf.mxu1 }
 0x332   :  { %v1280_v56 = vadd.f32 %v2721_v55, %v3364_v54 }
 0x333   :  { %v1274_v57 = vpop.f32.mrf.mxu1 }
 0x334   :  { %v1275_v58 = vadd.f32 %v3364_v54, %v1274_v57  ;;  %v1466_v59 = vmul.f32 0.01, %v1280_v56  ;;  %vm1434_vm1 = vcmp.ge.f32.partialorder %v1280_v56, 0.0 }
 0x335   :  { %v2724_v60 = vpop.f32.mrf.mxu1 }
 0x336   :  { %v1465_v61 = vmul.f32 0.01, %v1275_v58  ;;  %v1290_v62 = vadd.f32 %v2724_v60, %v3364_v54  ;;  %vm1433_vm2 = vcmp.ge.f32.partialorder %v1275_v58, 0.0  ;;  %v1498_v3 = vsel %vm1434_vm1, %v1280_v56, %v1466_v59 }
 0x337   :  { %v1284_v63 = vpop.f32.mrf.mxu1 }
 0x338   :  { %v1285_v0 = vadd.f32 %v3364_v54, %v1284_v63  ;;  %v1497_v1 = vsel %vm1433_vm2, %v1275_v58, %v1465_v61  ;;  %v1468_v4 = vmul.f32 0.01, %v1290_v62  ;;  %vm1436_vm4 = vcmp.ge.f32.partialorder %v1290_v62, 0.0 }
 0x339   :  { %v2727_v5 = vpop.f32.mrf.mxu1  ;;  %2799 = vmatprep.mubr.f32.mxu0 %v1497_v1 }
 0x33a   :  { %v1467_v6 = vmul.f32 0.01, %v1285_v0  ;;  %v1300_v7 = vadd.f32 %v2727_v5, %v3364_v54  ;;  %2800 = vmatmul.mubr.f32.vlgmr.msra.gmra.mxu0 %v1498_v3  ;;  %vm1435_vm3 = vcmp.ge.f32.partialorder %v1285_v0, 0.0  ;;  %v1500_v12 = vsel %vm1436_vm4, %v1290_v62, %v1468_v4 }
 0x33b   :  { %v1294_v2 = vpop.f32.mrf.mxu1  ;;  %2848 = vmatpush3.msra.mxu0 %v1887_v38 }
 0x33c   :  { %v1295_v8 = vadd.f32 %v3364_v54, %v1294_v2  ;;  %v1499_v9 = vsel %vm1435_vm3, %v1285_v0, %v1467_v6  ;;  %2849 = vmatprep.subr.mxu0 %v3287_v43  ;;  %v1470_v10 = vmul.f32 0.01, %v1300_v7  ;;  %vm1438_vm6 = vcmp.ge.f32.partialorder %v1300_v7, 0.0 }
 0x33d   :  { %v2730_v11 = vpop.f32.mrf.mxu1  ;;  %2802 = vmatprep.mubr.f32.mxu0 %v1499_v9  ;;  %2850 = vmatpush3.msra.mxu0 %v3287_v43 }
 0x33e   :  { %v1469_v13 = vmul.f32 0.01, %v1295_v8  ;;  %v1310_v14 = vadd.f32 %v2730_v11, %v3364_v54  ;;  %2803 = vmatmul.mubr.f32.gmra.mxu0 %v1500_v12  ;;  %vm1437_vm5 = vcmp.ge.f32.partialorder %v1295_v8, 0.0  ;;  %2851 = vmatprep.subr.mxu0 %v3294_v44  ;;  %v1502_v21 = vsel %vm1438_vm6, %v1300_v7, %v1470_v10 }
 0x33f   :  { %v1304_v15 = vpop.f32.mrf.mxu1  ;;  %2852 = vmatpush3.msra.mxu0 %v3294_v44 }
 0x340   :  { %v1305_v16 = vadd.f32 %v3364_v54, %v1304_v15  ;;  %v1501_v17 = vsel %vm1437_vm5, %v1295_v8, %v1469_v13  ;;  %2853 = vmatprep.subr.mxu0 %v3301_v45  ;;  %v1472_v18 = vmul.f32 0.01, %v1310_v14  ;;  %vm1440_vm8 = vcmp.ge.f32.partialorder %v1310_v14, 0.0 }
 0x341   :  { %v2733_v19 = vpop.f32.mrf.mxu1  ;;  %2805 = vmatprep.mubr.f32.mxu0 %v1501_v17  ;;  %2854 = vmatpush3.msra.mxu0 %v3301_v45 }
 0x342   :  { %v1471_v22 = vmul.f32 0.01, %v1305_v16  ;;  %v1320_v23 = vadd.f32 %v2733_v19, %v3364_v54  ;;  %2806 = vmatmul.mubr.f32.gmra.mxu0 %v1502_v21  ;;  %vm1439_vm7 = vcmp.ge.f32.partialorder %v1305_v16, 0.0  ;;  %2855 = vmatprep.subr.mxu0 %v3308_v46  ;;  %v1504_v28 = vsel %vm1440_vm8, %v1310_v14, %v1472_v18 }
 0x343   :  { %v1314_v24 = vpop.f32.mrf.mxu1  ;;  %2856 = vmatpush3.msra.mxu0 %v3308_v46 }
 0x344   :  { %v1315_v25 = vadd.f32 %v3364_v54, %v1314_v24  ;;  %v1503_v20 = vsel %vm1439_vm7, %v1305_v16, %v1471_v22  ;;  %2857 = vmatprep.subr.mxu0 %v3315_v47  ;;  %v1474_v26 = vmul.f32 0.01, %v1320_v23  ;;  %vm1442_vm10 = vcmp.ge.f32.partialorder %v1320_v23, 0.0 }
 0x345   :  { %v2736_v27 = vpop.f32.mrf.mxu1  ;;  %2808 = vmatprep.mubr.f32.mxu0 %v1503_v20  ;;  %2858 = vmatpush3.msra.mxu0 %v3315_v47 }
 0x346   :  { %v1473_v29 = vmul.f32 0.01, %v1315_v25  ;;  %v1330_v30 = vadd.f32 %v2736_v27, %v3364_v54  ;;  %2809 = vmatmul.mubr.f32.gmra.mxu0 %v1504_v28  ;;  %vm1441_vm9 = vcmp.ge.f32.partialorder %v1315_v25, 0.0  ;;  %2859 = vmatprep.subr.mxu0 %v3322_v48  ;;  %v1506_v36 = vsel %vm1442_vm10, %v1320_v23, %v1474_v26 }
 0x347   :  { %v1324_v31 = vpop.f32.mrf.mxu1  ;;  %2860 = vmatpush3.msra.mxu0 %v3322_v48 }
 0x348   :  { %v1325_v32 = vadd.f32 %v3364_v54, %v1324_v31  ;;  %v1505_v33 = vsel %vm1441_vm9, %v1315_v25, %v1473_v29  ;;  %2861 = vmatprep.subr.mxu0 %v3329_v49  ;;  %v1476_v34 = vmul.f32 0.01, %v1330_v30  ;;  %vm1444_vm12 = vcmp.ge.f32.partialorder %v1330_v30, 0.0 }
 0x349   :  { %v2739_v35 = vpop.f32.mrf.mxu1  ;;  %2811 = vmatprep.mubr.f32.mxu0 %v1505_v33  ;;  %2862 = vmatpush3.msra.mxu0 %v3329_v49 }
 0x34a   :  { %v1475_v37 = vmul.f32 0.01, %v1325_v32  ;;  %v1340_v39 = vadd.f32 %v2739_v35, %v3364_v54  ;;  %2812 = vmatmul.mubr.f32.gmra.mxu0 %v1506_v36  ;;  %vm1443_vm11 = vcmp.ge.f32.partialorder %v1325_v32, 0.0  ;;  %2863 = vmatprep.subr.mxu0 %v3336_v50  ;;  %v1508_v44 = vsel %vm1444_vm12, %v1330_v30, %v1476_v34 }
 0x34b   :  { %v1334_v40 = vpop.f32.mrf.mxu1  ;;  %2864 = vmatpush3.msra.mxu0 %v3336_v50 }
 0x34c   :  { %v1335_v41 = vadd.f32 %v3364_v54, %v1334_v40  ;;  %v1507_v42 = vsel %vm1443_vm11, %v1325_v32, %v1475_v37  ;;  %2865 = vmatprep.subr.mxu0 %v3343_v51  ;;  %v1478_v38 = vmul.f32 0.01, %v1340_v39  ;;  %vm1446_vm14 = vcmp.ge.f32.partialorder %v1340_v39, 0.0 }
 0x34d   :  { %v2742_v43 = vpop.f32.mrf.mxu1  ;;  %2814 = vmatprep.mubr.f32.mxu0 %v1507_v42  ;;  %2866 = vmatpush3.msra.mxu0 %v3343_v51 }
 0x34e   :  { %v1477_v45 = vmul.f32 0.01, %v1335_v41  ;;  %v1350_v46 = vadd.f32 %v2742_v43, %v3364_v54  ;;  %2815 = vmatmul.mubr.f32.gmra.mxu0 %v1508_v44  ;;  %vm1445_vm13 = vcmp.ge.f32.partialorder %v1335_v41, 0.0  ;;  %2867 = vmatprep.subr.mxu0 %v3350_v52  ;;  %v1510_v51 = vsel %vm1446_vm14, %v1340_v39, %v1478_v38 }
 0x34f   :  { %v1344_v47 = vpop.f32.mrf.mxu1  ;;  %2868 = vmatpush3.msra.mxu0 %v3350_v52 }
 0x350   :  { %v1345_v48 = vadd.f32 %v3364_v54, %v1344_v47  ;;  %v1509_v49 = vsel %vm1445_vm13, %v1335_v41, %v1477_v45  ;;  %2869 = vmatprep.subr.mxu0 %v3357_v53  ;;  %v1480_v50 = vmul.f32 0.01, %v1350_v46  ;;  %vm1448_vm0 = vcmp.ge.f32.partialorder %v1350_v46, 0.0 }
 0x351   :  { %v2745_v55 = vpop.f32.mrf.mxu1  ;;  %2817 = vmatprep.mubr.f32.mxu0 %v1509_v49  ;;  %2870 = vmatpush3.msra.mxu0 %v3357_v53 }
 0x352   :  { %v1479_v56 = vmul.f32 0.01, %v1345_v48  ;;  %v1360_v57 = vadd.f32 %v2745_v55, %v3364_v54  ;;  %2818 = vmatmul.mubr.f32.gmra.mxu0 %v1510_v51  ;;  %vm1447_vm15 = vcmp.ge.f32.partialorder %v1345_v48, 0.0  ;;  %v1512_v62 = vsel %vm1448_vm0, %v1350_v46, %v1480_v50 }
 0x353   :  { %v1354_v58 = vpop.f32.mrf.mxu1 }
 0x354   :  { %v1355_v52 = vadd.f32 %v3364_v54, %v1354_v58  ;;  %v1511_v59 = vsel %vm1447_vm15, %v1345_v48, %v1479_v56  ;;  %v1482_v60 = vmul.f32 0.01, %v1360_v57  ;;  %vm1450_vm2 = vcmp.ge.f32.partialorder %v1360_v57, 0.0 }
 0x355   :  { %v2748_v61 = vpop.f32.mrf.mxu1  ;;  %2820 = vmatprep.mubr.f32.mxu0 %v1511_v59  ;;  %v1873_v59 = vld [vmem:[%s3607_s5 + $0x8] sm:$0xff] }
 0x356   :  { %v1481_v63 = vmul.f32 0.01, %v1355_v52  ;;  %v1370_v0 = vadd.f32 %v2748_v61, %v3364_v54  ;;  %2821 = vmatmul.mubr.f32.gmra.mxu0 %v1512_v62  ;;  %vm1449_vm1 = vcmp.ge.f32.partialorder %v1355_v52, 0.0  ;;  %v1514_v6 = vsel %vm1450_vm2, %v1360_v57, %v1482_v60  ;;  %v1872_v60 = vld [vmem:[%s3607_s5] sm:$0xff] }
 0x357   :  { %v1364_v53 = vpop.f32.mrf.mxu1  ;;  %v3435_v61 = vld [vmem:[%s3606_s4 + $0x3] ss:$0 sm:$0xff] }
 0x358   :  { %v1365_v1 = vadd.f32 %v3364_v54, %v1364_v53  ;;  %v1513_v3 = vsel %vm1449_vm1, %v1355_v52, %v1481_v63  ;;  %v1484_v4 = vmul.f32 0.01, %v1370_v0  ;;  %vm1452_vm4 = vcmp.ge.f32.partialorder %v1370_v0, 0.0  ;;  %v1875_v52 = vld [vmem:[%s3607_s5 + $0x18] sm:$0xff] }
 0x359   :  { %v2751_v5 = vpop.f32.mrf.mxu1  ;;  %2823 = vmatprep.mubr.f32.mxu0 %v1513_v3  ;;  %2871 = vmatprep.subr.mxu0 %v1875_v52 }
 0x35a   :  { %v1483_v7 = vmul.f32 0.01, %v1365_v1  ;;  %v1380_v2 = vadd.f32 %v2751_v5, %v3364_v54  ;;  %2824 = vmatmul.mubr.f32.gmra.mxu0 %v1514_v6  ;;  %vm1451_vm3 = vcmp.ge.f32.partialorder %v1365_v1, 0.0  ;;  %v1516_v13 = vsel %vm1452_vm4, %v1370_v0, %v1484_v4  ;;  %2939 = vmatprep.subr.mxu1 %v1875_v52 }
 0x35b   :  { %v1374_v8 = vpop.f32.mrf.mxu1  ;;  %2872 = vmatpush3.msra.mxu0 %v1875_v52  ;;  %2955 = vmatpush3.msra.mxu1 %v1875_v52 }
 0x35c   :  { %v1375_v9 = vadd.f32 %v3364_v54, %v1374_v8  ;;  %v1515_v10 = vsel %vm1451_vm3, %v1365_v1, %v1483_v7  ;;  %v1486_v11 = vmul.f32 0.01, %v1380_v2  ;;  %vm1454_vm6 = vcmp.ge.f32.partialorder %v1380_v2, 0.0 }
 0x35d   :  { %v2754_v12 = vpop.f32.mrf.mxu1  ;;  %2826 = vmatprep.mubr.f32.mxu0 %v1515_v10 }
 0x35e   :  { %v1485_v14 = vmul.f32 0.01, %v1375_v9  ;;  %v1390_v15 = vadd.f32 %v2754_v12, %v3364_v54  ;;  %2827 = vmatmul.mubr.f32.gmra.mxu0 %v1516_v13  ;;  %vm1453_vm5 = vcmp.ge.f32.partialorder %v1375_v9, 0.0  ;;  %v1518_v22 = vsel %vm1454_vm6, %v1380_v2, %v1486_v11 }
 0x35f   :  { %v1384_v16 = vpop.f32.mrf.mxu1 }
 0x360   :  { %v1385_v17 = vadd.f32 %v3364_v54, %v1384_v16  ;;  %v1517_v18 = vsel %vm1453_vm5, %v1375_v9, %v1485_v14  ;;  %v1488_v19 = vmul.f32 0.01, %v1390_v15  ;;  %vm1456_vm8 = vcmp.ge.f32.partialorder %v1390_v15, 0.0 }
 0x361   :  { %v2757_v21 = vpop.f32.mrf.mxu1  ;;  %2829 = vmatprep.mubr.f32.mxu0 %v1517_v18 }
 0x362   :  { %v1487_v23 = vmul.f32 0.01, %v1385_v17  ;;  %v1400_v24 = vadd.f32 %v2757_v21, %v3364_v54  ;;  %2830 = vmatmul.mubr.f32.gmra.mxu0 %v1518_v22  ;;  %vm1455_vm7 = vcmp.ge.f32.partialorder %v1385_v17, 0.0  ;;  %v1520_v29 = vsel %vm1456_vm8, %v1390_v15, %v1488_v19 }
 0x363   :  { %v1394_v25 = vpop.f32.mrf.mxu1 }
 0x364   :  { %v1395_v20 = vadd.f32 %v3364_v54, %v1394_v25  ;;  %v1519_v26 = vsel %vm1455_vm7, %v1385_v17, %v1487_v23  ;;  %v1490_v27 = vmul.f32 0.01, %v1400_v24  ;;  %vm1458_vm10 = vcmp.ge.f32.partialorder %v1400_v24, 0.0 }
 0x365   :  { %v2760_v28 = vpop.f32.mrf.mxu1  ;;  %2832 = vmatprep.mubr.f32.mxu0 %v1519_v26 }
 0x366   :  { %v1489_v30 = vmul.f32 0.01, %v1395_v20  ;;  %v1410_v31 = vadd.f32 %v2760_v28, %v3364_v54  ;;  %2833 = vmatmul.mubr.f32.gmra.mxu0 %v1520_v29  ;;  %vm1457_vm9 = vcmp.ge.f32.partialorder %v1395_v20, 0.0  ;;  %v1522_v37 = vsel %vm1458_vm10, %v1400_v24, %v1490_v27 }
 0x367   :  { %v1404_v32 = vpop.f32.mrf.mxu1 }
 0x368   :  { %v1405_v33 = vadd.f32 %v3364_v54, %v1404_v32  ;;  %v1521_v34 = vsel %vm1457_vm9, %v1395_v20, %v1489_v30  ;;  %v1492_v35 = vmul.f32 0.01, %v1410_v31  ;;  %vm1460_vm12 = vcmp.ge.f32.partialorder %v1410_v31, 0.0 }
 0x369   :  { %v2763_v36 = vpop.f32.mrf.mxu1  ;;  %2835 = vmatprep.mubr.f32.mxu0 %v1521_v34 }
 0x36a   :  { %v1491_v39 = vmul.f32 0.01, %v1405_v33  ;;  %v1420_v40 = vadd.f32 %v2763_v36, %v3364_v54  ;;  %2836 = vmatmul.mubr.f32.gmra.mxu0 %v1522_v37  ;;  %vm1459_vm11 = vcmp.ge.f32.partialorder %v1405_v33, 0.0  ;;  %v1524_v45 = vsel %vm1460_vm12, %v1410_v31, %v1492_v35 }
 0x36b   :  { %v1414_v41 = vpop.f32.mrf.mxu1 }
 0x36c   :  { %v1415_v42 = vadd.f32 %v3364_v54, %v1414_v41  ;;  %v1523_v38 = vsel %vm1459_vm11, %v1405_v33, %v1491_v39  ;;  %v1494_v43 = vmul.f32 0.01, %v1420_v40  ;;  %vm1462_vm14 = vcmp.ge.f32.partialorder %v1420_v40, 0.0 }
 0x36d   :  { %v2766_v44 = vpop.f32.mrf.mxu1  ;;  %2838 = vmatprep.mubr.f32.mxu0 %v1523_v38 }
 0x36e   :  { %v1493_v46 = vmul.f32 0.01, %v1415_v42  ;;  %v1430_v47 = vadd.f32 %v2766_v44, %v3364_v54  ;;  %2839 = vmatmul.mubr.f32.gmra.mxu0 %v1524_v45  ;;  %vm1461_vm13 = vcmp.ge.f32.partialorder %v1415_v42, 0.0  ;;  %v1526_v51 = vsel %vm1462_vm14, %v1420_v40, %v1494_v43 }
 0x36f   :  { %v1424_v48 = vpop.f32.mrf.mxu1 }
 0x370   :  { %v1425_v49 = vadd.f32 %v3364_v54, %v1424_v48  ;;  %v1525_v50 = vsel %vm1461_vm13, %v1415_v42, %v1493_v46  ;;  %v1496_v55 = vmul.f32 0.01, %v1430_v47  ;;  %vm1464_vm0 = vcmp.ge.f32.partialorder %v1430_v47, 0.0  ;;  %v1874_v54 = vld [vmem:[%s3607_s5 + $0x10] sm:$0xff] }
 0x371   :  { %2841 = vmatprep.mubr.f32.mxu0 %v1525_v50  ;;  %2873 = vmatprep.subr.mxu0 %v1874_v54 }
 0x372   :  { %v1495_v56 = vmul.f32 0.01, %v1425_v49  ;;  %2842 = vmatmul.mubr.f32.gmra.mxu0 %v1526_v51  ;;  %vm1463_vm15 = vcmp.ge.f32.partialorder %v1425_v49, 0.0  ;;  %v1528_v58 = vsel %vm1464_vm0, %v1430_v47, %v1496_v55  ;;  %2940 = vmatprep.subr.mxu1 %v1874_v54 }
 0x373   :  { %2874 = vmatpush3.msra.mxu0 %v1874_v54  ;;  %2956 = vmatpush3.msra.mxu1 %v1874_v54 }
 0x374   :  { %v1527_v57 = vsel %vm1463_vm15, %v1425_v49, %v1495_v56  ;;  %2875 = vmatprep.subr.mxu0 %v1873_v59  ;;  %2941 = vmatprep.subr.mxu1 %v1873_v59 }
 0x375   :  { %2844 = vmatprep.mubr.f32.mxu0 %v1527_v57  ;;  %2876 = vmatpush3.msra.mxu0 %v1873_v59 }
 0x376   :  { %2845 = vmatmul.mubr.f32.gmra.mxu0 %v1528_v58  ;;  %2957 = vmatpush3.msra.mxu1 %v1873_v59 }
 0x377   :  { %2877 = vmatprep.subr.mxu0 %v1872_v60  ;;  %2942 = vmatprep.subr.mxu1 %v1872_v60 }
 0x378   :  { %2878 = vmatpush3.msra.mxu0 %v1872_v60  ;;  %2958 = vmatpush3.msra.mxu1 %v1872_v60 }
 0x3fa   :  { %v2801_v62 = vpop.f32.mrf.mxu0 }
 0x3fb   :  { %v1623_v63 = vadd.f32 %v2801_v62, %v3435_v61 }
 0x3fc   :  { %v1617_v0 = vpop.f32.mrf.mxu0 }
 0x3fd   :  { %v1618_v53 = vadd.f32 %v3435_v61, %v1617_v0  ;;  %v1809_v1 = vmul.f32 0.01, %v1623_v63  ;;  %vm1777_vm1 = vcmp.ge.f32.partialorder %v1623_v63, 0.0 }
 0x3fe   :  { %v2804_v3 = vpop.f32.mrf.mxu0 }
 0x3ff   :  { %v1808_v4 = vmul.f32 0.01, %v1618_v53  ;;  %v1633_v5 = vadd.f32 %v2804_v3, %v3435_v61  ;;  %vm1776_vm2 = vcmp.ge.f32.partialorder %v1618_v53, 0.0  ;;  %v1841_v8 = vsel %vm1777_vm1, %v1623_v63, %v1809_v1 }
 0x400   :  { %v1627_v6 = vpop.f32.mrf.mxu0 }
 0x401   :  { %v1628_v7 = vadd.f32 %v3435_v61, %v1627_v6  ;;  %v1840_v2 = vsel %vm1776_vm2, %v1618_v53, %v1808_v4  ;;  %v1811_v9 = vmul.f32 0.01, %v1633_v5  ;;  %vm1779_vm4 = vcmp.ge.f32.partialorder %v1633_v5, 0.0 }
 0x402   :  { %v2807_v10 = vpop.f32.mrf.mxu0  ;;  %2879 = vmatprep.mubr.f32.mxu0 %v1840_v2 }
 0x403   :  { %v1810_v11 = vmul.f32 0.01, %v1628_v7  ;;  %v1643_v12 = vadd.f32 %v2807_v10, %v3435_v61  ;;  %2880 = vmatmul.mubr.f32.vlgmr.msra.gmra.mxu0 %v1841_v8  ;;  %vm1778_vm3 = vcmp.ge.f32.partialorder %v1628_v7, 0.0  ;;  %v1843_v18 = vsel %vm1779_vm4, %v1633_v5, %v1811_v9 }
 0x404   :  { %v1637_v13 = vpop.f32.mrf.mxu0 }
 0x405   :  { %v1638_v14 = vadd.f32 %v3435_v61, %v1637_v13  ;;  %v1842_v15 = vsel %vm1778_vm3, %v1628_v7, %v1810_v11  ;;  %v1813_v16 = vmul.f32 0.01, %v1643_v12  ;;  %vm1781_vm6 = vcmp.ge.f32.partialorder %v1643_v12, 0.0 }
 0x406   :  { %v2810_v17 = vpop.f32.mrf.mxu0  ;;  %2882 = vmatprep.mubr.f32.mxu0 %v1842_v15 }
 0x407   :  { %v1812_v19 = vmul.f32 0.01, %v1638_v14  ;;  %v1653_v21 = vadd.f32 %v2810_v17, %v3435_v61  ;;  %2883 = vmatmul.mubr.f32.gmra.mxu0 %v1843_v18  ;;  %vm1780_vm5 = vcmp.ge.f32.partialorder %v1638_v14, 0.0  ;;  %v1845_v26 = vsel %vm1781_vm6, %v1643_v12, %v1813_v16 }
 0x408   :  { %v1647_v22 = vpop.f32.mrf.mxu0 }
 0x409   :  { %v1648_v23 = vadd.f32 %v3435_v61, %v1647_v22  ;;  %v1844_v24 = vsel %vm1780_vm5, %v1638_v14, %v1812_v19  ;;  %v1815_v25 = vmul.f32 0.01, %v1653_v21  ;;  %vm1783_vm7 = vcmp.ge.f32.partialorder %v1653_v21, 0.0 }
 0x40a   :  { %v2813_v20 = vpop.f32.mrf.mxu0  ;;  %2885 = vmatprep.mubr.f32.mxu0 %v1844_v24 }
 0x40b   :  { %v1814_v27 = vmul.f32 0.01, %v1648_v23  ;;  %v1663_v28 = vadd.f32 %v2813_v20, %v3435_v61  ;;  %2886 = vmatmul.mubr.f32.gmra.mxu0 %v1845_v26  ;;  %vm1782_vm8 = vcmp.ge.f32.partialorder %v1648_v23, 0.0  ;;  %v1847_v32 = vsel %vm1783_vm7, %v1653_v21, %v1815_v25 }
 0x40c   :  { %v1657_v29 = vpop.f32.mrf.mxu0 }
 0x40d   :  { %v1658_v30 = vadd.f32 %v3435_v61, %v1657_v29  ;;  %v1846_v31 = vsel %vm1782_vm8, %v1648_v23, %v1814_v27  ;;  %v1817_v33 = vmul.f32 0.01, %v1663_v28  ;;  %vm1785_vm10 = vcmp.ge.f32.partialorder %v1663_v28, 0.0 }
 0x40e   :  { %v2816_v34 = vpop.f32.mrf.mxu0  ;;  %2888 = vmatprep.mubr.f32.mxu1 %v1846_v31 }
 0x40f   :  { %v1816_v35 = vmul.f32 0.01, %v1658_v30  ;;  %v1673_v36 = vadd.f32 %v2816_v34, %v3435_v61  ;;  %2889 = vmatmul.mubr.f32.vlgmr.msra.gmra.mxu1 %v1847_v32  ;;  %vm1784_vm9 = vcmp.ge.f32.partialorder %v1658_v30, 0.0  ;;  %v1849_v38 = vsel %vm1785_vm10, %v1663_v28, %v1817_v33 }
 0x410   :  { %v1667_v37 = vpop.f32.mrf.mxu0 }
 0x411   :  { %v1668_v39 = vadd.f32 %v3435_v61, %v1667_v37  ;;  %v1848_v40 = vsel %vm1784_vm9, %v1658_v30, %v1816_v35  ;;  %v1819_v41 = vmul.f32 0.01, %v1673_v36  ;;  %vm1787_vm12 = vcmp.ge.f32.partialorder %v1673_v36, 0.0 }
 0x412   :  { %v2819_v42 = vpop.f32.mrf.mxu0  ;;  %2891 = vmatprep.mubr.f32.mxu1 %v1848_v40 }
 0x413   :  { %v1818_v43 = vmul.f32 0.01, %v1668_v39  ;;  %v1683_v44 = vadd.f32 %v2819_v42, %v3435_v61  ;;  %2892 = vmatmul.mubr.f32.gmra.mxu1 %v1849_v38  ;;  %vm1786_vm11 = vcmp.ge.f32.partialorder %v1668_v39, 0.0  ;;  %v1851_v50 = vsel %vm1787_vm12, %v1673_v36, %v1819_v41 }
 0x414   :  { %v1677_v45 = vpop.f32.mrf.mxu0 }
 0x415   :  { %v1678_v46 = vadd.f32 %v3435_v61, %v1677_v45  ;;  %v1850_v47 = vsel %vm1786_vm11, %v1668_v39, %v1818_v43  ;;  %v1821_v48 = vmul.f32 0.01, %v1683_v44  ;;  %vm1789_vm14 = vcmp.ge.f32.partialorder %v1683_v44, 0.0 }
 0x416   :  { %v2822_v49 = vpop.f32.mrf.mxu0  ;;  %2894 = vmatprep.mubr.f32.mxu1 %v1850_v47 }
 0x417   :  { %v1820_v55 = vmul.f32 0.01, %v1678_v46  ;;  %v1693_v51 = vadd.f32 %v2822_v49, %v3435_v61  ;;  %2895 = vmatmul.mubr.f32.gmra.mxu1 %v1851_v50  ;;  %vm1788_vm13 = vcmp.ge.f32.partialorder %v1678_v46, 0.0  ;;  %v1853_v59 = vsel %vm1789_vm14, %v1683_v44, %v1821_v48 }
 0x418   :  { %v1687_v56 = vpop.f32.mrf.mxu0 }
 0x419   :  { %v1688_v57 = vadd.f32 %v3435_v61, %v1687_v56  ;;  %v1852_v58 = vsel %vm1788_vm13, %v1678_v46, %v1820_v55  ;;  %v1823_v52 = vmul.f32 0.01, %v1693_v51  ;;  %vm1791_vm0 = vcmp.ge.f32.partialorder %v1693_v51, 0.0 }
 0x41a   :  { %v2825_v54 = vpop.f32.mrf.mxu0  ;;  %2897 = vmatprep.mubr.f32.mxu1 %v1852_v58 }
 0x41b   :  { %v1822_v60 = vmul.f32 0.01, %v1688_v57  ;;  %v1703_v62 = vadd.f32 %v2825_v54, %v3435_v61  ;;  %2898 = vmatmul.mubr.f32.gmra.mxu1 %v1853_v59  ;;  %vm1790_vm15 = vcmp.ge.f32.partialorder %v1688_v57, 0.0  ;;  %v1855_v4 = vsel %vm1791_vm0, %v1693_v51, %v1823_v52 }
 0x41c   :  { %v1697_v63 = vpop.f32.mrf.mxu0 }
 0x41d   :  { %v1698_v0 = vadd.f32 %v3435_v61, %v1697_v63  ;;  %v1854_v53 = vsel %vm1790_vm15, %v1688_v57, %v1822_v60  ;;  %v1825_v1 = vmul.f32 0.01, %v1703_v62  ;;  %vm1793_vm2 = vcmp.ge.f32.partialorder %v1703_v62, 0.0 }
 0x41e   :  { %v2828_v3 = vpop.f32.mrf.mxu0  ;;  %2900 = vmatprep.mubr.f32.mxu1 %v1854_v53 }
 0x41f   :  { %v1824_v5 = vmul.f32 0.01, %v1698_v0  ;;  %v1713_v6 = vadd.f32 %v2828_v3, %v3435_v61  ;;  %2901 = vmatmul.mubr.f32.gmra.mxu1 %v1855_v4  ;;  %vm1792_vm1 = vcmp.ge.f32.partialorder %v1698_v0, 0.0  ;;  %v1857_v11 = vsel %vm1793_vm2, %v1703_v62, %v1825_v1 }
 0x420   :  { %v1707_v7 = vpop.f32.mrf.mxu0 }
 0x421   :  { %v1708_v2 = vadd.f32 %v3435_v61, %v1707_v7  ;;  %v1856_v8 = vsel %vm1792_vm1, %v1698_v0, %v1824_v5  ;;  %v1827_v9 = vmul.f32 0.01, %v1713_v6  ;;  %vm1795_vm4 = vcmp.ge.f32.partialorder %v1713_v6, 0.0  ;;  %v3472_v0 = vld [vmem:[%s3608_s6] ss:$0 sm:$0xff] }
 0x422   :  { %v2831_v10 = vpop.f32.mrf.mxu0  ;;  %2903 = vmatprep.mubr.f32.mxu1 %v1856_v8 }
 0x423   :  { %v1826_v12 = vmul.f32 0.01, %v1708_v2  ;;  %v1723_v13 = vadd.f32 %v2831_v10, %v3435_v61  ;;  %2904 = vmatmul.mubr.f32.gmra.mxu1 %v1857_v11  ;;  %vm1794_vm3 = vcmp.ge.f32.partialorder %v1708_v2, 0.0  ;;  %v1859_v19 = vsel %vm1795_vm4, %v1713_v6, %v1827_v9 }
 0x424   :  { %v1717_v14 = vpop.f32.mrf.mxu0 }
 0x425   :  { %v1718_v15 = vadd.f32 %v3435_v61, %v1717_v14  ;;  %v1858_v16 = vsel %vm1794_vm3, %v1708_v2, %v1826_v12  ;;  %v1829_v17 = vmul.f32 0.01, %v1723_v13  ;;  %vm1797_vm6 = vcmp.ge.f32.partialorder %v1723_v13, 0.0 }
 0x426   :  { %v2834_v18 = vpop.f32.mrf.mxu0  ;;  %2906 = vmatprep.mubr.f32.mxu1 %v1858_v16 }
 0x427   :  { %v1828_v21 = vmul.f32 0.01, %v1718_v15  ;;  %v1733_v22 = vadd.f32 %v2834_v18, %v3435_v61  ;;  %2907 = vmatmul.mubr.f32.gmra.mxu1 %v1859_v19  ;;  %vm1796_vm5 = vcmp.ge.f32.partialorder %v1718_v15, 0.0  ;;  %v1861_v27 = vsel %vm1797_vm6, %v1723_v13, %v1829_v17 }
 0x428   :  { %v1727_v23 = vpop.f32.mrf.mxu0 }
 0x429   :  { %v1728_v24 = vadd.f32 %v3435_v61, %v1727_v23  ;;  %v1860_v25 = vsel %vm1796_vm5, %v1718_v15, %v1828_v21  ;;  %v1831_v20 = vmul.f32 0.01, %v1733_v22  ;;  %vm1799_vm8 = vcmp.ge.f32.partialorder %v1733_v22, 0.0 }
 0x42a   :  { %v2837_v26 = vpop.f32.mrf.mxu0  ;;  %2909 = vmatprep.mubr.f32.mxu1 %v1860_v25 }
 0x42b   :  { %v1830_v28 = vmul.f32 0.01, %v1728_v24  ;;  %v1743_v29 = vadd.f32 %v2837_v26, %v3435_v61  ;;  %2910 = vmatmul.mubr.f32.gmra.mxu1 %v1861_v27  ;;  %vm1798_vm7 = vcmp.ge.f32.partialorder %v1728_v24, 0.0  ;;  %v1863_v35 = vsel %vm1799_vm8, %v1733_v22, %v1831_v20 }
 0x42c   :  { %v1737_v30 = vpop.f32.mrf.mxu0 }
 0x42d   :  { %v1738_v31 = vadd.f32 %v3435_v61, %v1737_v30  ;;  %v1862_v32 = vsel %vm1798_vm7, %v1728_v24, %v1830_v28  ;;  %v1833_v33 = vmul.f32 0.01, %v1743_v29  ;;  %vm1801_vm10 = vcmp.ge.f32.partialorder %v1743_v29, 0.0 }
 0x42e   :  { %v2840_v34 = vpop.f32.mrf.mxu0  ;;  %2912 = vmatprep.mubr.f32.mxu1 %v1862_v32 }
 0x42f   :  { %v1832_v36 = vmul.f32 0.01, %v1738_v31  ;;  %v1753_v37 = vadd.f32 %v2840_v34, %v3435_v61  ;;  %2913 = vmatmul.mubr.f32.gmra.mxu1 %v1863_v35  ;;  %vm1800_vm9 = vcmp.ge.f32.partialorder %v1738_v31, 0.0  ;;  %v1865_v43 = vsel %vm1801_vm10, %v1743_v29, %v1833_v33 }
 0x430   :  { %v1747_v39 = vpop.f32.mrf.mxu0 }
 0x431   :  { %v1748_v40 = vadd.f32 %v3435_v61, %v1747_v39  ;;  %v1864_v41 = vsel %vm1800_vm9, %v1738_v31, %v1832_v36  ;;  %v1835_v42 = vmul.f32 0.01, %v1753_v37  ;;  %vm1803_vm12 = vcmp.ge.f32.partialorder %v1753_v37, 0.0 }
 0x432   :  { %v2843_v38 = vpop.f32.mrf.mxu0  ;;  %2915 = vmatprep.mubr.f32.mxu1 %v1864_v41 }
 0x433   :  { %v1834_v44 = vmul.f32 0.01, %v1748_v40  ;;  %v1763_v45 = vadd.f32 %v2843_v38, %v3435_v61  ;;  %2916 = vmatmul.mubr.f32.gmra.mxu1 %v1865_v43  ;;  %vm1802_vm11 = vcmp.ge.f32.partialorder %v1748_v40, 0.0  ;;  %v1867_v55 = vsel %vm1803_vm12, %v1753_v37, %v1835_v42 }
 0x434   :  { %v1757_v46 = vpop.f32.mrf.mxu0 }
 0x435   :  { %v1758_v47 = vadd.f32 %v3435_v61, %v1757_v46  ;;  %v1866_v48 = vsel %vm1802_vm11, %v1748_v40, %v1834_v44  ;;  %v1837_v49 = vmul.f32 0.01, %v1763_v45  ;;  %vm1805_vm14 = vcmp.ge.f32.partialorder %v1763_v45, 0.0 }
 0x436   :  { %v2846_v50 = vpop.f32.mrf.mxu0  ;;  %2918 = vmatprep.mubr.f32.mxu1 %v1866_v48 }
 0x437   :  { %v1836_v51 = vmul.f32 0.01, %v1758_v47  ;;  %v1773_v56 = vadd.f32 %v2846_v50, %v3435_v61  ;;  %2919 = vmatmul.mubr.f32.gmra.mxu1 %v1867_v55  ;;  %vm1804_vm13 = vcmp.ge.f32.partialorder %v1758_v47, 0.0  ;;  %v1869_v59 = vsel %vm1805_vm14, %v1763_v45, %v1837_v49 }
 0x438   :  { %v1767_v57 = vpop.f32.mrf.mxu0 }
 0x439   :  { %v1768_v58 = vadd.f32 %v3435_v61, %v1767_v57  ;;  %v1868_v52 = vsel %vm1804_vm13, %v1758_v47, %v1836_v51  ;;  %v1839_v54 = vmul.f32 0.01, %v1773_v56  ;;  %vm1807_vm0 = vcmp.ge.f32.partialorder %v1773_v56, 0.0 }
 0x43a   :  { %2921 = vmatprep.mubr.f32.mxu1 %v1868_v52 }
 0x43b   :  { %v1838_v60 = vmul.f32 0.01, %v1768_v58  ;;  %2922 = vmatmul.mubr.f32.gmra.mxu1 %v1869_v59  ;;  %vm1806_vm15 = vcmp.ge.f32.partialorder %v1768_v58, 0.0  ;;  %v1871_v63 = vsel %vm1807_vm0, %v1773_v56, %v1839_v54 }
 0x43d   :  { %v1870_v62 = vsel %vm1806_vm15, %v1768_v58, %v1838_v60 }
 0x43e   :  { %2924 = vmatprep.mubr.f32.mxu1 %v1870_v62 }
 0x43f   :  { %2925 = vmatmul.mubr.f32.gmra.mxu1 %v1871_v63 }
 0x4c3   :  { %v2881_v53 = vpop.f32.mrf.mxu0 }
 0x4c4   :  { %v1967_v61 = vadd.f32 %v2881_v53, %v3472_v0 }
 0x4c5   :  { %v1961_v1 = vpop.f32.mrf.mxu0 }
 0x4c6   :  { %2121 = vst [vmem:[%s3609_s7 + $0x8] sm:$0xff] %v1967_v61  ;;  %v1962_v3 = vadd.f32 %v3472_v0, %v1961_v1 }
 0x4c7   :  { %v2884_v4 = vpop.f32.mrf.mxu0 }
 0x4c8   :  { %2120 = vst [vmem:[%s3609_s7] sm:$0xff] %v1962_v3  ;;  %v1977_v5 = vadd.f32 %v2884_v4, %v3472_v0 }
 0x4c9   :  { %v1971_v6 = vpop.f32.mrf.mxu0 }
 0x4ca   :  { %2123 = vst [vmem:[%s3609_s7 + $0x18] sm:$0xff] %v1977_v5  ;;  %v1972_v7 = vadd.f32 %v3472_v0, %v1971_v6 }
 0x4cb   :  { %v2887_v2 = vpop.f32.mrf.mxu0 }
 0x4cc   :  { %2122 = vst [vmem:[%s3609_s7 + $0x10] sm:$0xff] %v1972_v7  ;;  %v1987_v8 = vadd.f32 %v2887_v2, %v3472_v0 }
 0x4cd   :  { %v1981_v9 = vpop.f32.mrf.mxu0 }
 0x4ce   :  { %2125 = vst [vmem:[%s3609_s7 + $0x28] sm:$0xff] %v1987_v8  ;;  %v1982_v10 = vadd.f32 %v3472_v0, %v1981_v9 }
 0x4cf   :  { %v2890_v11 = vpop.f32.mrf.mxu1 }
 0x4d0   :  { %2124 = vst [vmem:[%s3609_s7 + $0x20] sm:$0xff] %v1982_v10  ;;  %v1997_v12 = vadd.f32 %v2890_v11, %v3472_v0 }
 0x4d1   :  { %v1991_v13 = vpop.f32.mrf.mxu1 }
 0x4d2   :  { %2127 = vst [vmem:[%s3609_s7 + $0x38] sm:$0xff] %v1997_v12  ;;  %v1992_v14 = vadd.f32 %v3472_v0, %v1991_v13 }
 0x4d3   :  { %v2893_v15 = vpop.f32.mrf.mxu1 }
 0x4d4   :  { %2126 = vst [vmem:[%s3609_s7 + $0x30] sm:$0xff] %v1992_v14  ;;  %v2007_v16 = vadd.f32 %v2893_v15, %v3472_v0 }
 0x4d5   :  { %v2001_v17 = vpop.f32.mrf.mxu1 }
 0x4d6   :  { %2129 = vst [vmem:[%s3609_s7 + $0x48] sm:$0xff] %v2007_v16  ;;  %v2002_v18 = vadd.f32 %v3472_v0, %v2001_v17 }
 0x4d7   :  { %v2896_v19 = vpop.f32.mrf.mxu1 }
 0x4d8   :  { %2128 = vst [vmem:[%s3609_s7 + $0x40] sm:$0xff] %v2002_v18  ;;  %v2017_v21 = vadd.f32 %v2896_v19, %v3472_v0 }
 0x4d9   :  { %v2011_v22 = vpop.f32.mrf.mxu1 }
 0x4da   :  { %2131 = vst [vmem:[%s3609_s7 + $0x58] sm:$0xff] %v2017_v21  ;;  %v2012_v23 = vadd.f32 %v3472_v0, %v2011_v22 }
 0x4db   :  { %v2899_v24 = vpop.f32.mrf.mxu1 }
 0x4dc   :  { %2130 = vst [vmem:[%s3609_s7 + $0x50] sm:$0xff] %v2012_v23  ;;  %v2027_v25 = vadd.f32 %v2899_v24, %v3472_v0 }
 0x4dd   :  { %v2021_v20 = vpop.f32.mrf.mxu1 }
 0x4de   :  { %2133 = vst [vmem:[%s3609_s7 + $0x68] sm:$0xff] %v2027_v25  ;;  %v2022_v26 = vadd.f32 %v3472_v0, %v2021_v20 }
 0x4df   :  { %v2902_v27 = vpop.f32.mrf.mxu1 }
 0x4e0   :  { %2132 = vst [vmem:[%s3609_s7 + $0x60] sm:$0xff] %v2022_v26  ;;  %v2037_v28 = vadd.f32 %v2902_v27, %v3472_v0 }
 0x4e1   :  { %v2031_v29 = vpop.f32.mrf.mxu1 }
 0x4e2   :  { %2135 = vst [vmem:[%s3609_s7 + $0x78] sm:$0xff] %v2037_v28  ;;  %v2032_v30 = vadd.f32 %v3472_v0, %v2031_v29 }
 0x4e3   :  { %v2905_v31 = vpop.f32.mrf.mxu1 }
 0x4e4   :  { %2134 = vst [vmem:[%s3609_s7 + $0x70] sm:$0xff] %v2032_v30  ;;  %v2047_v32 = vadd.f32 %v2905_v31, %v3472_v0 }
 0x4e5   :  { %v2041_v33 = vpop.f32.mrf.mxu1 }
 0x4e6   :  { %2137 = vst [vmem:[%s3609_s7 + $0x88] sm:$0xff] %v2047_v32  ;;  %v2042_v34 = vadd.f32 %v3472_v0, %v2041_v33 }
 0x4e7   :  { %v2908_v35 = vpop.f32.mrf.mxu1 }
 0x4e8   :  { %2136 = vst [vmem:[%s3609_s7 + $0x80] sm:$0xff] %v2042_v34  ;;  %v2057_v36 = vadd.f32 %v2908_v35, %v3472_v0 }
 0x4e9   :  { %v2051_v37 = vpop.f32.mrf.mxu1 }
 0x4ea   :  { %2139 = vst [vmem:[%s3609_s7 + $0x98] sm:$0xff] %v2057_v36  ;;  %v2052_v39 = vadd.f32 %v3472_v0, %v2051_v37 }
 0x4eb   :  { %v2911_v40 = vpop.f32.mrf.mxu1 }
 0x4ec   :  { %2138 = vst [vmem:[%s3609_s7 + $0x90] sm:$0xff] %v2052_v39  ;;  %v2067_v41 = vadd.f32 %v2911_v40, %v3472_v0 }
 0x4ed   :  { %v2061_v42 = vpop.f32.mrf.mxu1 }
 0x4ee   :  { %2141 = vst [vmem:[%s3609_s7 + $0xa8] sm:$0xff] %v2067_v41  ;;  %v2062_v38 = vadd.f32 %v3472_v0, %v2061_v42 }
 0x4ef   :  { %v2914_v43 = vpop.f32.mrf.mxu1 }
 0x4f0   :  { %2140 = vst [vmem:[%s3609_s7 + $0xa0] sm:$0xff] %v2062_v38  ;;  %v2077_v44 = vadd.f32 %v2914_v43, %v3472_v0 }
 0x4f1   :  { %v2071_v45 = vpop.f32.mrf.mxu1 }
 0x4f2   :  { %2143 = vst [vmem:[%s3609_s7 + $0xb8] sm:$0xff] %v2077_v44  ;;  %v2072_v46 = vadd.f32 %v3472_v0, %v2071_v45 }
 0x4f3   :  { %v2917_v47 = vpop.f32.mrf.mxu1 }
 0x4f4   :  { %2142 = vst [vmem:[%s3609_s7 + $0xb0] sm:$0xff] %v2072_v46  ;;  %v2087_v48 = vadd.f32 %v2917_v47, %v3472_v0 }
 0x4f5   :  { %v2081_v49 = vpop.f32.mrf.mxu1 }
 0x4f6   :  { %2145 = vst [vmem:[%s3609_s7 + $0xc8] sm:$0xff] %v2087_v48  ;;  %v2082_v50 = vadd.f32 %v3472_v0, %v2081_v49 }
 0x4f7   :  { %v2920_v55 = vpop.f32.mrf.mxu1 }
 0x4f8   :  { %2144 = vst [vmem:[%s3609_s7 + $0xc0] sm:$0xff] %v2082_v50  ;;  %v2097_v51 = vadd.f32 %v2920_v55, %v3472_v0 }
 0x4f9   :  { %v2091_v56 = vpop.f32.mrf.mxu1 }
 0x4fa   :  { %2147 = vst [vmem:[%s3609_s7 + $0xd8] sm:$0xff] %v2097_v51  ;;  %v2092_v57 = vadd.f32 %v3472_v0, %v2091_v56 }
 0x4fb   :  { %v2923_v58 = vpop.f32.mrf.mxu1 }
 0x4fc   :  { %2146 = vst [vmem:[%s3609_s7 + $0xd0] sm:$0xff] %v2092_v57  ;;  %v2107_v52 = vadd.f32 %v2923_v58, %v3472_v0 }
 0x4fd   :  { %v2101_v54 = vpop.f32.mrf.mxu1 }
 0x4fe   :  { %2149 = vst [vmem:[%s3609_s7 + $0xe8] sm:$0xff] %v2107_v52  ;;  %v2102_v59 = vadd.f32 %v3472_v0, %v2101_v54 }
 0x4ff   :  { %v2926_v60 = vpop.f32.mrf.mxu1 }
 0x500   :  { %2148 = vst [vmem:[%s3609_s7 + $0xe0] sm:$0xff] %v2102_v59  ;;  %v2117_v62 = vadd.f32 %v2926_v60, %v3472_v0 }
 0x501   :  { %v2111_v63 = vpop.f32.mrf.mxu1 }
 0x502   :  { %2151 = vst [vmem:[%s3609_s7 + $0xf8] sm:$0xff] %v2117_v62  ;;  %v2112_v53 = vadd.f32 %v3472_v0, %v2111_v63 }
 0x504   :  { %2150 = vst [vmem:[%s3609_s7 + $0xf0] sm:$0xff] %v2112_v53 }
 0x505   :  { %2156 = vsyncpa [#allocation3], 1 }

</bundles_post_ra>
